<compile_context>
chip_gen: v7x
topology: tpu7x:2x2x1
jax: 0.10.0
libtpu: 0.0.40
codegen_flags: <defaults>
</compile_context>

<pallas_src>
import jax
import jax.numpy as jnp
from jax.experimental import pallas as pl
from jax.experimental.pallas import tpu as pltpu


# ---------------------------------------------------------------------------
# Hardware-aware sizing helpers
# ---------------------------------------------------------------------------
def _vmem_capacity_bytes():
    default = 64 * 1024 * 1024          # v7x-conservative fallback
    try:
        info = pltpu.get_tpu_info()
        return int(getattr(info, "vmem_capacity_bytes", default))
    except Exception:
        return default


def _choose_tiles(B, C, F, HW, itemsize, is_video, vmem_cap):
    """Pick (tile_b, tile_f) from a generation-aware input-bytes budget."""
    # Input bytes per grid step: larger on 128 MiB parts (v5e/v6e), smaller on
    # 64 MiB parts (v7x) so buffers + f32 temporaries stay well inside VMEM.
    target = (6 << 20) if vmem_cap >= (96 << 20) else (3 << 20)
    per_frame = C * HW * itemsize
    if is_video:
        tile_f = F
        per_sample = per_frame * F
        if per_sample > target:
            tile_b = 1
            # A frame tile must divide F and be a multiple of 8 (sublane tile)
            # to keep the block layout dense.
            cands = [f for f in range(8, F, 8) if F % f == 0]
            for f in sorted(cands, reverse=True):
                if f * per_frame <= target:
                    tile_f = f
                    break
            else:
                tile_f = min(cands) if cands else F
            # TODO(synk): very large per-sample (C * tile_f * HW) footprints
            # would need an HW-tiled two-pass (online) softmax; one frame-tiled
            # sample is assumed to fit VMEM here.
        else:
            tile_b = max(1, min(B, target // per_sample))
    else:
        tile_f = 1
        tile_b = max(1, min(B, target // max(per_frame, 1)))

    def steps(tb, tf):
        s = -(-B // tb)
        if is_video:
            s *= F // tf
        return s

    # Aim for >= 4 grid steps (two per v7x TensorCore) when the batch allows.
    while steps(tile_b, tile_f) < 4 and tile_b > 1:
        tile_b = max(1, tile_b // 2)
    # Rebalance so batch padding is minimal for the resulting grid.
    grid_b = -(-B // tile_b)
    tile_b = -(-B // grid_b)
    return tile_b, tile_f


# ---------------------------------------------------------------------------
# Kernel: one block of tile_b samples, (C, HW) for images or (C, tile_f, HW)
# for video. Everything but the softmax/pooling accumulation stays tiny.
# ---------------------------------------------------------------------------
def _squeeze_excite_kernel(wk_ref, x_ref, w1_ref, b1_ref, w2_ref, b2_ref, o_ref):
    f32 = jnp.float32
    is_video = len(x_ref.shape) == 4         # (TB, C, F, HW) vs (TB, C, HW)
    C = x_ref.shape[1]

    # --- to_k logits: per-channel scalar (SMEM) broadcast MACs on the VPU ---
    logits = x_ref[:, 0].astype(f32) * wk_ref[0, 0]
    for c in range(1, C):
        logits = logits + x_ref[:, c].astype(f32) * wk_ref[0, c]
    # (TB, F, HW) or (TB, HW).  to_k bias dropped: softmax is shift invariant.

    # --- softmax over the spatial axis (denominator on the EUP) ---
    m = jnp.max(logits, axis=-1, keepdims=True)
    e = jnp.exp(logits - m)
    attn = e * pl.reciprocal(jnp.sum(e, axis=-1, keepdims=True), approx=True)

    # --- attention pooling over space (x_ref re-read; the cast fuses here) ---
    if is_video:
        pooled = jnp.sum(x_ref[...].astype(f32) * attn[:, None, :, :], axis=-1)
        TB, _, Fb = pooled.shape
        p = jnp.swapaxes(pooled, 1, 2).reshape(TB * Fb, C)    # tiny relayout
    else:
        pooled = jnp.sum(x_ref[...].astype(f32) * attn[:, None, :], axis=-1)
        p = pooled                                            # (TB, C)

    # --- gating MLP: tiny dots at default precision, sigmoid via the EUP ---
    z1 = jnp.dot(p, w1_ref[...], preferred_element_type=f32) + b1_ref[...]
    h = jnp.where(z1 >= 0, z1, 0.1 * z1)                      # LeakyReLU(0.1)
    z2 = jnp.dot(h, w2_ref[...], preferred_element_type=f32) + b2_ref[...]
    gates = pl.reciprocal(1.0 + jnp.exp(-z2), approx=True)    # sigmoid

    # --- gate the input in its native dtype (bf16 stays bf16 on v6e/v7x) ---
    if is_video:
        g = jnp.swapaxes(gates.reshape(TB, Fb, C), 1, 2)      # (TB, C, Fb)
        o_ref[...] = (x_ref[...] * g[:, :, :, None].astype(o_ref.dtype)
                      ).astype(o_ref.dtype)
    else:
        o_ref[...] = (x_ref[...] * gates[:, :, None].astype(o_ref.dtype)
                      ).astype(o_ref.dtype)


# ---------------------------------------------------------------------------
# Wrapper
# ---------------------------------------------------------------------------
def squeeze_excite_forward(x, wk, bk, w1, b1, w2, b2):
    """SqueezeExcite forward.

    x  : (B, C, H, W) or (B, C, F, H, W)
    wk : (C,)    to_k 1x1-conv weight;  bk: () its bias (mathematically a
                 no-op under the softmax, so it is not used)
    w1 : (Dh, C) net[0] weight, b1: (Dh,)
    w2 : (C, Dh) net[2] weight, b2: (C,)
    """
    del bk  # softmax shift invariance
    orig_shape = x.shape
    is_video = x.ndim == 5
    if is_video:
        B, C, F, H, W = x.shape
    else:
        B, C, H, W = x.shape
        F = 1
    HW = H * W
    Cout, Dh = w2.shape
    assert Cout == C, "gating broadcast requires dim_out == dim"
    assert w1.shape == (Dh, C)

    in_dtype = x.dtype
    itemsize = jnp.dtype(in_dtype).itemsize
    # Merge trailing spatial dims only (free); keep the native (B, C, [F])
    # order so no HBM transpose is generated on either side.
    x_packed = x.reshape(B, C, F, HW) if is_video else x.reshape(B, C, HW)
    # TODO(synk): HW not a multiple of 128 (e.g. 14x14 / 7x7 maps) falls back
    # to masked stores; a padded-lane variant with a masked softmax would
    # restore lane-dense stores.

    vmem_cap = _vmem_capacity_bytes()
    tile_b, tile_f = _choose_tiles(B, C, F, HW, itemsize, is_video, vmem_cap)
    grid_b = pl.cdiv(B, tile_b)
    B_pad = grid_b * tile_b
    if B_pad != B:
        pad = [(0, B_pad - B)] + [(0, 0)] * (x_packed.ndim - 1)
        x_packed = jnp.pad(x_packed, pad)   # zero rows: finite, sliced off

    # Weights: wk lives in SMEM (scalar-broadcast path); MLP weights as small
    # f32 VMEM blocks already transposed for the in-kernel dots.
    f32 = jnp.float32
    wk_r = jnp.asarray(wk, f32).reshape(1, C)
    w1_t = jnp.asarray(w1, f32).T               # (C, Dh)
    b1_r = jnp.asarray(b1, f32).reshape(1, Dh)
    w2_t = jnp.asarray(w2, f32).T               # (Dh, C)
    b2_r = jnp.asarray(b2, f32).reshape(1, C)

    if is_video:
        grid = (grid_b, F // tile_f)
        data_spec = pl.BlockSpec((tile_b, C, tile_f, HW),
                                 lambda i, j: (i, 0, j, 0))

        def const_spec(shape):
            return pl.BlockSpec(shape, lambda i, j: (0,) * len(shape))

        out_shape = jax.ShapeDtypeStruct((B_pad, C, F, HW), in_dtype)
        semantics = ("parallel", "parallel")
    else:
        grid = (grid_b,)
        data_spec = pl.BlockSpec((tile_b, C, HW), lambda i: (i, 0, 0))

        def const_spec(shape):
            return pl.BlockSpec(shape, lambda i: (0,) * len(shape))

        out_shape = jax.ShapeDtypeStruct((B_pad, C, HW), in_dtype)
        semantics = ("parallel",)

    wk_spec = pl.BlockSpec(memory_space=pltpu.MemorySpace.SMEM)

    # VMEM budget: in/out double buffers + ~3.5 full-block f32 temporaries.
    # (An extra pl.Buffered(3) on the data specs is an option on v5e/v6e if
    # DMA remains exposed; kept at the default depth here.)
    block_elems = tile_b * C * (tile_f if is_video else 1) * HW
    footprint = (4 * block_elems * itemsize
                 + int(3.5 * block_elems * 4) + (1 << 20))
    vmem_limit = int(min(max(footprint, 32 << 20),
                         max(32 << 20, vmem_cap - (8 << 20))))

    flops = B_pad * F * (HW * (4 * C + 6) + 4 * C * Dh)
    transcendentals = B_pad * F * (HW + C + 2)
    bytes_accessed = (2 * B_pad * C * F * HW * itemsize
                      + 4 * (3 * C + 2 * C * Dh + Dh))

    out = pl.pallas_call(
        _squeeze_excite_kernel,
        out_shape=out_shape,
        grid_spec=pltpu.PrefetchScalarGridSpec(
            num_scalar_prefetch=0,
            grid=grid,
            in_specs=[
                wk_spec,                    # (1, C) to_k weight in SMEM
                data_spec,                  # x block
                const_spec((C, Dh)),        # w1^T
                const_spec((1, Dh)),        # b1
                const_spec((Dh, C)),        # w2^T
                const_spec((1, C)),         # b2
            ],
            out_specs=data_spec,
        ),
        compiler_params=pltpu.CompilerParams(
            dimension_semantics=semantics,
            vmem_limit_bytes=vmem_limit),
        cost_estimate=pl.CostEstimate(
            flops=flops, transcendentals=transcendentals,
            bytes_accessed=bytes_accessed),
    )(wk_r, x_packed, w1_t, b1_r, w2_t, b2_r)

    return out[:B].reshape(orig_shape)


# ---------------------------------------------------------------------------
# Pure-JAX reference mirroring the PyTorch module
# ---------------------------------------------------------------------------
def reference_forward(x, wk, bk, w1, b1, w2, b2):
    orig = x
    if x.ndim == 5:
        B, C, F, H, W = x.shape
        xr = jnp.transpose(x, (0, 2, 1, 3, 4)).reshape(B * F, C, H, W)
    else:
        xr = x
    N, C, H, W = xr.shape
    xf = xr.reshape(N, C, H * W)
    logits = jnp.einsum("ncp,c->np", xf, wk, precision="highest") + bk
    attn = jax.nn.softmax(logits, axis=-1)
    pooled = jnp.einsum("np,ncp->nc", attn, xf, precision="highest")
    z1 = jnp.dot(pooled, w1.T, precision="highest") + b1
    h = jnp.where(z1 >= 0, z1, 0.1 * z1)
    gates = jax.nn.sigmoid(jnp.dot(h, w2.T, precision="highest") + b2)  # (N, C)
    if orig.ndim == 5:
        B, C, F, H, W = orig.shape
        gates = jnp.transpose(gates.reshape(B, F, C), (0, 2, 1))[..., None, None]
    else:
        gates = gates[..., None, None]
    return gates * orig


if __name__ == "__main__":
    key = jax.random.PRNGKey(0)
    kx, kx2, kk, kb, k1, kb1, k2, kb2 = jax.random.split(key, 8)

    C, Dh = 32, 16            # dim=32 -> dim_hidden = max(16, 32 // 2) = 16
    wk = jax.random.normal(kk, (C,), dtype=jnp.float32) * 0.5
    bk = jax.random.normal(kb, (), dtype=jnp.float32)
    w1 = jax.random.normal(k1, (Dh, C), dtype=jnp.float32) * 0.3
    b1 = jax.random.normal(kb1, (Dh,), dtype=jnp.float32) * 0.1
    w2 = jax.random.normal(k2, (C, Dh), dtype=jnp.float32) * 0.3
    b2 = jax.random.normal(kb2, (C,), dtype=jnp.float32) * 0.1
    # NOTE: the PyTorch module initializes net[-2].weight = 0, bias = -10;
    # random weights are used so the correctness check is non-trivial.

    # Video input (B, C, F, H, W) and image input (B, C, H, W); the image
    # path exercises the frame-free (TB, C, HW) block layout.
    xv = jax.random.normal(kx, (2, C, 8, 16, 16), dtype=jnp.float32)
    xi = jax.random.normal(kx2, (3, C, 16, 16), dtype=jnp.float32)

    for x in (xv, xi):
        out = jax.block_until_ready(
            squeeze_excite_forward(x, wk, bk, w1, b1, w2, b2))
        ref = jax.block_until_ready(
            reference_forward(x, wk, bk, w1, b1, w2, b2))
        assert out.shape == x.shape
        err = float(jnp.max(jnp.abs(out - ref)))
        # Tolerance budget: EUP approx reciprocals (softmax denom + sigmoid)
        # and default-precision MXU dots vs the "highest"-precision reference.
        assert err < 2.5e-2, f"mismatch vs reference: {err}"

    print("KERNEL_OK")
</pallas_src>

<mosaic_0001>
module attributes {stable_mosaic.version = 11 : i64} {
  func.func @_squeeze_excite_kernel(%arg0: i32, %arg1: i32, %arg2: memref<1x32xf32, #tpu.memory_space<smem>>, %arg3: memref<1x32x8x256xf32, #tpu.memory_space<vmem>>, %arg4: memref<32x16xf32, #tpu.memory_space<vmem>>, %arg5: memref<1x16xf32, #tpu.memory_space<vmem>>, %arg6: memref<16x32xf32, #tpu.memory_space<vmem>>, %arg7: memref<1x32xf32, #tpu.memory_space<vmem>>, %arg8: memref<1x32x8x256xf32, #tpu.memory_space<vmem>>) attributes {dimension_semantics = [#tpu.dimension_semantics<parallel>, #tpu.dimension_semantics<parallel>], iteration_bounds = array<i64: 2, 1>, scalar_prefetch = 0 : i64, scratch_operands = 0 : i64, tpu.core_type = #tpu.core_type<tc>, window_params = [{transform_indices = @transform_0, window_bounds = array<i64: 1, 32>}, {transform_indices = @transform_1, window_bounds = array<i64: 1, 32, 8, 256>}, {pipeline_mode = #tpu.pipeline_mode<synchronous>, transform_indices = @transform_2, window_bounds = array<i64: 32, 16>}, {pipeline_mode = #tpu.pipeline_mode<synchronous>, transform_indices = @transform_3, window_bounds = array<i64: 1, 16>}, {pipeline_mode = #tpu.pipeline_mode<synchronous>, transform_indices = @transform_4, window_bounds = array<i64: 16, 32>}, {pipeline_mode = #tpu.pipeline_mode<synchronous>, transform_indices = @transform_5, window_bounds = array<i64: 1, 32>}, {transform_indices = @transform_6, window_bounds = array<i64: 1, 32, 8, 256>}]} {
    %c0 = arith.constant 0 : index
    %c0_0 = arith.constant 0 : index
    %c0_1 = arith.constant 0 : index
    %c0_2 = arith.constant 0 : index
    %0 = vector.load %arg3[%c0, %c0_0, %c0_1, %c0_2] : memref<1x32x8x256xf32, #tpu.memory_space<vmem>>, vector<1x1x8x256xf32>
    %1 = vector.shape_cast %0 : vector<1x1x8x256xf32> to vector<1x8x256xf32>
    %c0_3 = arith.constant 0 : index
    %c0_4 = arith.constant 0 : index
    %2 = memref.load %arg2[%c0_3, %c0_4] : memref<1x32xf32, #tpu.memory_space<smem>>
    %3 = vector.broadcast %2 : f32 to vector<1x8x256xf32>
    %4 = arith.mulf %1, %3 : vector<1x8x256xf32>
    %c0_5 = arith.constant 0 : index
    %c1 = arith.constant 1 : index
    %c0_6 = arith.constant 0 : index
    %c0_7 = arith.constant 0 : index
    %5 = vector.load %arg3[%c0_5, %c1, %c0_6, %c0_7] : memref<1x32x8x256xf32, #tpu.memory_space<vmem>>, vector<1x1x8x256xf32>
    %6 = vector.shape_cast %5 : vector<1x1x8x256xf32> to vector<1x8x256xf32>
    %c0_8 = arith.constant 0 : index
    %c1_9 = arith.constant 1 : index
    %7 = memref.load %arg2[%c0_8, %c1_9] : memref<1x32xf32, #tpu.memory_space<smem>>
    %8 = vector.broadcast %7 : f32 to vector<1x8x256xf32>
    %9 = arith.mulf %6, %8 : vector<1x8x256xf32>
    %10 = arith.addf %4, %9 : vector<1x8x256xf32>
    %c0_10 = arith.constant 0 : index
    %c2 = arith.constant 2 : index
    %c0_11 = arith.constant 0 : index
    %c0_12 = arith.constant 0 : index
    %11 = vector.load %arg3[%c0_10, %c2, %c0_11, %c0_12] : memref<1x32x8x256xf32, #tpu.memory_space<vmem>>, vector<1x1x8x256xf32>
    %12 = vector.shape_cast %11 : vector<1x1x8x256xf32> to vector<1x8x256xf32>
    %c0_13 = arith.constant 0 : index
    %c2_14 = arith.constant 2 : index
    %13 = memref.load %arg2[%c0_13, %c2_14] : memref<1x32xf32, #tpu.memory_space<smem>>
    %14 = vector.broadcast %13 : f32 to vector<1x8x256xf32>
    %15 = arith.mulf %12, %14 : vector<1x8x256xf32>
    %16 = arith.addf %10, %15 : vector<1x8x256xf32>
    %c0_15 = arith.constant 0 : index
    %c3 = arith.constant 3 : index
    %c0_16 = arith.constant 0 : index
    %c0_17 = arith.constant 0 : index
    %17 = vector.load %arg3[%c0_15, %c3, %c0_16, %c0_17] : memref<1x32x8x256xf32, #tpu.memory_space<vmem>>, vector<1x1x8x256xf32>
    %18 = vector.shape_cast %17 : vector<1x1x8x256xf32> to vector<1x8x256xf32>
    %c0_18 = arith.constant 0 : index
    %c3_19 = arith.constant 3 : index
    %19 = memref.load %arg2[%c0_18, %c3_19] : memref<1x32xf32, #tpu.memory_space<smem>>
    %20 = vector.broadcast %19 : f32 to vector<1x8x256xf32>
    %21 = arith.mulf %18, %20 : vector<1x8x256xf32>
    %22 = arith.addf %16, %21 : vector<1x8x256xf32>
    %c0_20 = arith.constant 0 : index
    %c4 = arith.constant 4 : index
    %c0_21 = arith.constant 0 : index
    %c0_22 = arith.constant 0 : index
    %23 = vector.load %arg3[%c0_20, %c4, %c0_21, %c0_22] : memref<1x32x8x256xf32, #tpu.memory_space<vmem>>, vector<1x1x8x256xf32>
    %24 = vector.shape_cast %23 : vector<1x1x8x256xf32> to vector<1x8x256xf32>
    %c0_23 = arith.constant 0 : index
    %c4_24 = arith.constant 4 : index
    %25 = memref.load %arg2[%c0_23, %c4_24] : memref<1x32xf32, #tpu.memory_space<smem>>
    %26 = vector.broadcast %25 : f32 to vector<1x8x256xf32>
    %27 = arith.mulf %24, %26 : vector<1x8x256xf32>
    %28 = arith.addf %22, %27 : vector<1x8x256xf32>
    %c0_25 = arith.constant 0 : index
    %c5 = arith.constant 5 : index
    %c0_26 = arith.constant 0 : index
    %c0_27 = arith.constant 0 : index
    %29 = vector.load %arg3[%c0_25, %c5, %c0_26, %c0_27] : memref<1x32x8x256xf32, #tpu.memory_space<vmem>>, vector<1x1x8x256xf32>
    %30 = vector.shape_cast %29 : vector<1x1x8x256xf32> to vector<1x8x256xf32>
    %c0_28 = arith.constant 0 : index
    %c5_29 = arith.constant 5 : index
    %31 = memref.load %arg2[%c0_28, %c5_29] : memref<1x32xf32, #tpu.memory_space<smem>>
    %32 = vector.broadcast %31 : f32 to vector<1x8x256xf32>
    %33 = arith.mulf %30, %32 : vector<1x8x256xf32>
    %34 = arith.addf %28, %33 : vector<1x8x256xf32>
    %c0_30 = arith.constant 0 : index
    %c6 = arith.constant 6 : index
    %c0_31 = arith.constant 0 : index
    %c0_32 = arith.constant 0 : index
    %35 = vector.load %arg3[%c0_30, %c6, %c0_31, %c0_32] : memref<1x32x8x256xf32, #tpu.memory_space<vmem>>, vector<1x1x8x256xf32>
    %36 = vector.shape_cast %35 : vector<1x1x8x256xf32> to vector<1x8x256xf32>
    %c0_33 = arith.constant 0 : index
    %c6_34 = arith.constant 6 : index
    %37 = memref.load %arg2[%c0_33, %c6_34] : memref<1x32xf32, #tpu.memory_space<smem>>
    %38 = vector.broadcast %37 : f32 to vector<1x8x256xf32>
    %39 = arith.mulf %36, %38 : vector<1x8x256xf32>
    %40 = arith.addf %34, %39 : vector<1x8x256xf32>
    %c0_35 = arith.constant 0 : index
    %c7 = arith.constant 7 : index
    %c0_36 = arith.constant 0 : index
    %c0_37 = arith.constant 0 : index
    %41 = vector.load %arg3[%c0_35, %c7, %c0_36, %c0_37] : memref<1x32x8x256xf32, #tpu.memory_space<vmem>>, vector<1x1x8x256xf32>
    %42 = vector.shape_cast %41 : vector<1x1x8x256xf32> to vector<1x8x256xf32>
    %c0_38 = arith.constant 0 : index
    %c7_39 = arith.constant 7 : index
    %43 = memref.load %arg2[%c0_38, %c7_39] : memref<1x32xf32, #tpu.memory_space<smem>>
    %44 = vector.broadcast %43 : f32 to vector<1x8x256xf32>
    %45 = arith.mulf %42, %44 : vector<1x8x256xf32>
    %46 = arith.addf %40, %45 : vector<1x8x256xf32>
    %c0_40 = arith.constant 0 : index
    %c8 = arith.constant 8 : index
    %c0_41 = arith.constant 0 : index
    %c0_42 = arith.constant 0 : index
    %47 = vector.load %arg3[%c0_40, %c8, %c0_41, %c0_42] : memref<1x32x8x256xf32, #tpu.memory_space<vmem>>, vector<1x1x8x256xf32>
    %48 = vector.shape_cast %47 : vector<1x1x8x256xf32> to vector<1x8x256xf32>
    %c0_43 = arith.constant 0 : index
    %c8_44 = arith.constant 8 : index
    %49 = memref.load %arg2[%c0_43, %c8_44] : memref<1x32xf32, #tpu.memory_space<smem>>
    %50 = vector.broadcast %49 : f32 to vector<1x8x256xf32>
    %51 = arith.mulf %48, %50 : vector<1x8x256xf32>
    %52 = arith.addf %46, %51 : vector<1x8x256xf32>
    %c0_45 = arith.constant 0 : index
    %c9 = arith.constant 9 : index
    %c0_46 = arith.constant 0 : index
    %c0_47 = arith.constant 0 : index
    %53 = vector.load %arg3[%c0_45, %c9, %c0_46, %c0_47] : memref<1x32x8x256xf32, #tpu.memory_space<vmem>>, vector<1x1x8x256xf32>
    %54 = vector.shape_cast %53 : vector<1x1x8x256xf32> to vector<1x8x256xf32>
    %c0_48 = arith.constant 0 : index
    %c9_49 = arith.constant 9 : index
    %55 = memref.load %arg2[%c0_48, %c9_49] : memref<1x32xf32, #tpu.memory_space<smem>>
    %56 = vector.broadcast %55 : f32 to vector<1x8x256xf32>
    %57 = arith.mulf %54, %56 : vector<1x8x256xf32>
    %58 = arith.addf %52, %57 : vector<1x8x256xf32>
    %c0_50 = arith.constant 0 : index
    %c10 = arith.constant 10 : index
    %c0_51 = arith.constant 0 : index
    %c0_52 = arith.constant 0 : index
    %59 = vector.load %arg3[%c0_50, %c10, %c0_51, %c0_52] : memref<1x32x8x256xf32, #tpu.memory_space<vmem>>, vector<1x1x8x256xf32>
    %60 = vector.shape_cast %59 : vector<1x1x8x256xf32> to vector<1x8x256xf32>
    %c0_53 = arith.constant 0 : index
    %c10_54 = arith.constant 10 : index
    %61 = memref.load %arg2[%c0_53, %c10_54] : memref<1x32xf32, #tpu.memory_space<smem>>
    %62 = vector.broadcast %61 : f32 to vector<1x8x256xf32>
    %63 = arith.mulf %60, %62 : vector<1x8x256xf32>
    %64 = arith.addf %58, %63 : vector<1x8x256xf32>
    %c0_55 = arith.constant 0 : index
    %c11 = arith.constant 11 : index
    %c0_56 = arith.constant 0 : index
    %c0_57 = arith.constant 0 : index
    %65 = vector.load %arg3[%c0_55, %c11, %c0_56, %c0_57] : memref<1x32x8x256xf32, #tpu.memory_space<vmem>>, vector<1x1x8x256xf32>
    %66 = vector.shape_cast %65 : vector<1x1x8x256xf32> to vector<1x8x256xf32>
    %c0_58 = arith.constant 0 : index
    %c11_59 = arith.constant 11 : index
    %67 = memref.load %arg2[%c0_58, %c11_59] : memref<1x32xf32, #tpu.memory_space<smem>>
    %68 = vector.broadcast %67 : f32 to vector<1x8x256xf32>
    %69 = arith.mulf %66, %68 : vector<1x8x256xf32>
    %70 = arith.addf %64, %69 : vector<1x8x256xf32>
    %c0_60 = arith.constant 0 : index
    %c12 = arith.constant 12 : index
    %c0_61 = arith.constant 0 : index
    %c0_62 = arith.constant 0 : index
    %71 = vector.load %arg3[%c0_60, %c12, %c0_61, %c0_62] : memref<1x32x8x256xf32, #tpu.memory_space<vmem>>, vector<1x1x8x256xf32>
    %72 = vector.shape_cast %71 : vector<1x1x8x256xf32> to vector<1x8x256xf32>
    %c0_63 = arith.constant 0 : index
    %c12_64 = arith.constant 12 : index
    %73 = memref.load %arg2[%c0_63, %c12_64] : memref<1x32xf32, #tpu.memory_space<smem>>
    %74 = vector.broadcast %73 : f32 to vector<1x8x256xf32>
    %75 = arith.mulf %72, %74 : vector<1x8x256xf32>
    %76 = arith.addf %70, %75 : vector<1x8x256xf32>
    %c0_65 = arith.constant 0 : index
    %c13 = arith.constant 13 : index
    %c0_66 = arith.constant 0 : index
    %c0_67 = arith.constant 0 : index
    %77 = vector.load %arg3[%c0_65, %c13, %c0_66, %c0_67] : memref<1x32x8x256xf32, #tpu.memory_space<vmem>>, vector<1x1x8x256xf32>
    %78 = vector.shape_cast %77 : vector<1x1x8x256xf32> to vector<1x8x256xf32>
    %c0_68 = arith.constant 0 : index
    %c13_69 = arith.constant 13 : index
    %79 = memref.load %arg2[%c0_68, %c13_69] : memref<1x32xf32, #tpu.memory_space<smem>>
    %80 = vector.broadcast %79 : f32 to vector<1x8x256xf32>
    %81 = arith.mulf %78, %80 : vector<1x8x256xf32>
    %82 = arith.addf %76, %81 : vector<1x8x256xf32>
    %c0_70 = arith.constant 0 : index
    %c14 = arith.constant 14 : index
    %c0_71 = arith.constant 0 : index
    %c0_72 = arith.constant 0 : index
    %83 = vector.load %arg3[%c0_70, %c14, %c0_71, %c0_72] : memref<1x32x8x256xf32, #tpu.memory_space<vmem>>, vector<1x1x8x256xf32>
    %84 = vector.shape_cast %83 : vector<1x1x8x256xf32> to vector<1x8x256xf32>
    %c0_73 = arith.constant 0 : index
    %c14_74 = arith.constant 14 : index
    %85 = memref.load %arg2[%c0_73, %c14_74] : memref<1x32xf32, #tpu.memory_space<smem>>
    %86 = vector.broadcast %85 : f32 to vector<1x8x256xf32>
    %87 = arith.mulf %84, %86 : vector<1x8x256xf32>
    %88 = arith.addf %82, %87 : vector<1x8x256xf32>
    %c0_75 = arith.constant 0 : index
    %c15 = arith.constant 15 : index
    %c0_76 = arith.constant 0 : index
    %c0_77 = arith.constant 0 : index
    %89 = vector.load %arg3[%c0_75, %c15, %c0_76, %c0_77] : memref<1x32x8x256xf32, #tpu.memory_space<vmem>>, vector<1x1x8x256xf32>
    %90 = vector.shape_cast %89 : vector<1x1x8x256xf32> to vector<1x8x256xf32>
    %c0_78 = arith.constant 0 : index
    %c15_79 = arith.constant 15 : index
    %91 = memref.load %arg2[%c0_78, %c15_79] : memref<1x32xf32, #tpu.memory_space<smem>>
    %92 = vector.broadcast %91 : f32 to vector<1x8x256xf32>
    %93 = arith.mulf %90, %92 : vector<1x8x256xf32>
    %94 = arith.addf %88, %93 : vector<1x8x256xf32>
    %c0_80 = arith.constant 0 : index
    %c16 = arith.constant 16 : index
    %c0_81 = arith.constant 0 : index
    %c0_82 = arith.constant 0 : index
    %95 = vector.load %arg3[%c0_80, %c16, %c0_81, %c0_82] : memref<1x32x8x256xf32, #tpu.memory_space<vmem>>, vector<1x1x8x256xf32>
    %96 = vector.shape_cast %95 : vector<1x1x8x256xf32> to vector<1x8x256xf32>
    %c0_83 = arith.constant 0 : index
    %c16_84 = arith.constant 16 : index
    %97 = memref.load %arg2[%c0_83, %c16_84] : memref<1x32xf32, #tpu.memory_space<smem>>
    %98 = vector.broadcast %97 : f32 to vector<1x8x256xf32>
    %99 = arith.mulf %96, %98 : vector<1x8x256xf32>
    %100 = arith.addf %94, %99 : vector<1x8x256xf32>
    %c0_85 = arith.constant 0 : index
    %c17 = arith.constant 17 : index
    %c0_86 = arith.constant 0 : index
    %c0_87 = arith.constant 0 : index
    %101 = vector.load %arg3[%c0_85, %c17, %c0_86, %c0_87] : memref<1x32x8x256xf32, #tpu.memory_space<vmem>>, vector<1x1x8x256xf32>
    %102 = vector.shape_cast %101 : vector<1x1x8x256xf32> to vector<1x8x256xf32>
    %c0_88 = arith.constant 0 : index
    %c17_89 = arith.constant 17 : index
    %103 = memref.load %arg2[%c0_88, %c17_89] : memref<1x32xf32, #tpu.memory_space<smem>>
    %104 = vector.broadcast %103 : f32 to vector<1x8x256xf32>
    %105 = arith.mulf %102, %104 : vector<1x8x256xf32>
    %106 = arith.addf %100, %105 : vector<1x8x256xf32>
    %c0_90 = arith.constant 0 : index
    %c18 = arith.constant 18 : index
    %c0_91 = arith.constant 0 : index
    %c0_92 = arith.constant 0 : index
    %107 = vector.load %arg3[%c0_90, %c18, %c0_91, %c0_92] : memref<1x32x8x256xf32, #tpu.memory_space<vmem>>, vector<1x1x8x256xf32>
    %108 = vector.shape_cast %107 : vector<1x1x8x256xf32> to vector<1x8x256xf32>
    %c0_93 = arith.constant 0 : index
    %c18_94 = arith.constant 18 : index
    %109 = memref.load %arg2[%c0_93, %c18_94] : memref<1x32xf32, #tpu.memory_space<smem>>
    %110 = vector.broadcast %109 : f32 to vector<1x8x256xf32>
    %111 = arith.mulf %108, %110 : vector<1x8x256xf32>
    %112 = arith.addf %106, %111 : vector<1x8x256xf32>
    %c0_95 = arith.constant 0 : index
    %c19 = arith.constant 19 : index
    %c0_96 = arith.constant 0 : index
    %c0_97 = arith.constant 0 : index
    %113 = vector.load %arg3[%c0_95, %c19, %c0_96, %c0_97] : memref<1x32x8x256xf32, #tpu.memory_space<vmem>>, vector<1x1x8x256xf32>
    %114 = vector.shape_cast %113 : vector<1x1x8x256xf32> to vector<1x8x256xf32>
    %c0_98 = arith.constant 0 : index
    %c19_99 = arith.constant 19 : index
    %115 = memref.load %arg2[%c0_98, %c19_99] : memref<1x32xf32, #tpu.memory_space<smem>>
    %116 = vector.broadcast %115 : f32 to vector<1x8x256xf32>
    %117 = arith.mulf %114, %116 : vector<1x8x256xf32>
    %118 = arith.addf %112, %117 : vector<1x8x256xf32>
    %c0_100 = arith.constant 0 : index
    %c20 = arith.constant 20 : index
    %c0_101 = arith.constant 0 : index
    %c0_102 = arith.constant 0 : index
    %119 = vector.load %arg3[%c0_100, %c20, %c0_101, %c0_102] : memref<1x32x8x256xf32, #tpu.memory_space<vmem>>, vector<1x1x8x256xf32>
    %120 = vector.shape_cast %119 : vector<1x1x8x256xf32> to vector<1x8x256xf32>
    %c0_103 = arith.constant 0 : index
    %c20_104 = arith.constant 20 : index
    %121 = memref.load %arg2[%c0_103, %c20_104] : memref<1x32xf32, #tpu.memory_space<smem>>
    %122 = vector.broadcast %121 : f32 to vector<1x8x256xf32>
    %123 = arith.mulf %120, %122 : vector<1x8x256xf32>
    %124 = arith.addf %118, %123 : vector<1x8x256xf32>
    %c0_105 = arith.constant 0 : index
    %c21 = arith.constant 21 : index
    %c0_106 = arith.constant 0 : index
    %c0_107 = arith.constant 0 : index
    %125 = vector.load %arg3[%c0_105, %c21, %c0_106, %c0_107] : memref<1x32x8x256xf32, #tpu.memory_space<vmem>>, vector<1x1x8x256xf32>
    %126 = vector.shape_cast %125 : vector<1x1x8x256xf32> to vector<1x8x256xf32>
    %c0_108 = arith.constant 0 : index
    %c21_109 = arith.constant 21 : index
    %127 = memref.load %arg2[%c0_108, %c21_109] : memref<1x32xf32, #tpu.memory_space<smem>>
    %128 = vector.broadcast %127 : f32 to vector<1x8x256xf32>
    %129 = arith.mulf %126, %128 : vector<1x8x256xf32>
    %130 = arith.addf %124, %129 : vector<1x8x256xf32>
    %c0_110 = arith.constant 0 : index
    %c22 = arith.constant 22 : index
    %c0_111 = arith.constant 0 : index
    %c0_112 = arith.constant 0 : index
    %131 = vector.load %arg3[%c0_110, %c22, %c0_111, %c0_112] : memref<1x32x8x256xf32, #tpu.memory_space<vmem>>, vector<1x1x8x256xf32>
    %132 = vector.shape_cast %131 : vector<1x1x8x256xf32> to vector<1x8x256xf32>
    %c0_113 = arith.constant 0 : index
    %c22_114 = arith.constant 22 : index
    %133 = memref.load %arg2[%c0_113, %c22_114] : memref<1x32xf32, #tpu.memory_space<smem>>
    %134 = vector.broadcast %133 : f32 to vector<1x8x256xf32>
    %135 = arith.mulf %132, %134 : vector<1x8x256xf32>
    %136 = arith.addf %130, %135 : vector<1x8x256xf32>
    %c0_115 = arith.constant 0 : index
    %c23 = arith.constant 23 : index
    %c0_116 = arith.constant 0 : index
    %c0_117 = arith.constant 0 : index
    %137 = vector.load %arg3[%c0_115, %c23, %c0_116, %c0_117] : memref<1x32x8x256xf32, #tpu.memory_space<vmem>>, vector<1x1x8x256xf32>
    %138 = vector.shape_cast %137 : vector<1x1x8x256xf32> to vector<1x8x256xf32>
    %c0_118 = arith.constant 0 : index
    %c23_119 = arith.constant 23 : index
    %139 = memref.load %arg2[%c0_118, %c23_119] : memref<1x32xf32, #tpu.memory_space<smem>>
    %140 = vector.broadcast %139 : f32 to vector<1x8x256xf32>
    %141 = arith.mulf %138, %140 : vector<1x8x256xf32>
    %142 = arith.addf %136, %141 : vector<1x8x256xf32>
    %c0_120 = arith.constant 0 : index
    %c24 = arith.constant 24 : index
    %c0_121 = arith.constant 0 : index
    %c0_122 = arith.constant 0 : index
    %143 = vector.load %arg3[%c0_120, %c24, %c0_121, %c0_122] : memref<1x32x8x256xf32, #tpu.memory_space<vmem>>, vector<1x1x8x256xf32>
    %144 = vector.shape_cast %143 : vector<1x1x8x256xf32> to vector<1x8x256xf32>
    %c0_123 = arith.constant 0 : index
    %c24_124 = arith.constant 24 : index
    %145 = memref.load %arg2[%c0_123, %c24_124] : memref<1x32xf32, #tpu.memory_space<smem>>
    %146 = vector.broadcast %145 : f32 to vector<1x8x256xf32>
    %147 = arith.mulf %144, %146 : vector<1x8x256xf32>
    %148 = arith.addf %142, %147 : vector<1x8x256xf32>
    %c0_125 = arith.constant 0 : index
    %c25 = arith.constant 25 : index
    %c0_126 = arith.constant 0 : index
    %c0_127 = arith.constant 0 : index
    %149 = vector.load %arg3[%c0_125, %c25, %c0_126, %c0_127] : memref<1x32x8x256xf32, #tpu.memory_space<vmem>>, vector<1x1x8x256xf32>
    %150 = vector.shape_cast %149 : vector<1x1x8x256xf32> to vector<1x8x256xf32>
    %c0_128 = arith.constant 0 : index
    %c25_129 = arith.constant 25 : index
    %151 = memref.load %arg2[%c0_128, %c25_129] : memref<1x32xf32, #tpu.memory_space<smem>>
    %152 = vector.broadcast %151 : f32 to vector<1x8x256xf32>
    %153 = arith.mulf %150, %152 : vector<1x8x256xf32>
    %154 = arith.addf %148, %153 : vector<1x8x256xf32>
    %c0_130 = arith.constant 0 : index
    %c26 = arith.constant 26 : index
    %c0_131 = arith.constant 0 : index
    %c0_132 = arith.constant 0 : index
    %155 = vector.load %arg3[%c0_130, %c26, %c0_131, %c0_132] : memref<1x32x8x256xf32, #tpu.memory_space<vmem>>, vector<1x1x8x256xf32>
    %156 = vector.shape_cast %155 : vector<1x1x8x256xf32> to vector<1x8x256xf32>
    %c0_133 = arith.constant 0 : index
    %c26_134 = arith.constant 26 : index
    %157 = memref.load %arg2[%c0_133, %c26_134] : memref<1x32xf32, #tpu.memory_space<smem>>
    %158 = vector.broadcast %157 : f32 to vector<1x8x256xf32>
    %159 = arith.mulf %156, %158 : vector<1x8x256xf32>
    %160 = arith.addf %154, %159 : vector<1x8x256xf32>
    %c0_135 = arith.constant 0 : index
    %c27 = arith.constant 27 : index
    %c0_136 = arith.constant 0 : index
    %c0_137 = arith.constant 0 : index
    %161 = vector.load %arg3[%c0_135, %c27, %c0_136, %c0_137] : memref<1x32x8x256xf32, #tpu.memory_space<vmem>>, vector<1x1x8x256xf32>
    %162 = vector.shape_cast %161 : vector<1x1x8x256xf32> to vector<1x8x256xf32>
    %c0_138 = arith.constant 0 : index
    %c27_139 = arith.constant 27 : index
    %163 = memref.load %arg2[%c0_138, %c27_139] : memref<1x32xf32, #tpu.memory_space<smem>>
    %164 = vector.broadcast %163 : f32 to vector<1x8x256xf32>
    %165 = arith.mulf %162, %164 : vector<1x8x256xf32>
    %166 = arith.addf %160, %165 : vector<1x8x256xf32>
    %c0_140 = arith.constant 0 : index
    %c28 = arith.constant 28 : index
    %c0_141 = arith.constant 0 : index
    %c0_142 = arith.constant 0 : index
    %167 = vector.load %arg3[%c0_140, %c28, %c0_141, %c0_142] : memref<1x32x8x256xf32, #tpu.memory_space<vmem>>, vector<1x1x8x256xf32>
    %168 = vector.shape_cast %167 : vector<1x1x8x256xf32> to vector<1x8x256xf32>
    %c0_143 = arith.constant 0 : index
    %c28_144 = arith.constant 28 : index
    %169 = memref.load %arg2[%c0_143, %c28_144] : memref<1x32xf32, #tpu.memory_space<smem>>
    %170 = vector.broadcast %169 : f32 to vector<1x8x256xf32>
    %171 = arith.mulf %168, %170 : vector<1x8x256xf32>
    %172 = arith.addf %166, %171 : vector<1x8x256xf32>
    %c0_145 = arith.constant 0 : index
    %c29 = arith.constant 29 : index
    %c0_146 = arith.constant 0 : index
    %c0_147 = arith.constant 0 : index
    %173 = vector.load %arg3[%c0_145, %c29, %c0_146, %c0_147] : memref<1x32x8x256xf32, #tpu.memory_space<vmem>>, vector<1x1x8x256xf32>
    %174 = vector.shape_cast %173 : vector<1x1x8x256xf32> to vector<1x8x256xf32>
    %c0_148 = arith.constant 0 : index
    %c29_149 = arith.constant 29 : index
    %175 = memref.load %arg2[%c0_148, %c29_149] : memref<1x32xf32, #tpu.memory_space<smem>>
    %176 = vector.broadcast %175 : f32 to vector<1x8x256xf32>
    %177 = arith.mulf %174, %176 : vector<1x8x256xf32>
    %178 = arith.addf %172, %177 : vector<1x8x256xf32>
    %c0_150 = arith.constant 0 : index
    %c30 = arith.constant 30 : index
    %c0_151 = arith.constant 0 : index
    %c0_152 = arith.constant 0 : index
    %179 = vector.load %arg3[%c0_150, %c30, %c0_151, %c0_152] : memref<1x32x8x256xf32, #tpu.memory_space<vmem>>, vector<1x1x8x256xf32>
    %180 = vector.shape_cast %179 : vector<1x1x8x256xf32> to vector<1x8x256xf32>
    %c0_153 = arith.constant 0 : index
    %c30_154 = arith.constant 30 : index
    %181 = memref.load %arg2[%c0_153, %c30_154] : memref<1x32xf32, #tpu.memory_space<smem>>
    %182 = vector.broadcast %181 : f32 to vector<1x8x256xf32>
    %183 = arith.mulf %180, %182 : vector<1x8x256xf32>
    %184 = arith.addf %178, %183 : vector<1x8x256xf32>
    %c0_155 = arith.constant 0 : index
    %c31 = arith.constant 31 : index
    %c0_156 = arith.constant 0 : index
    %c0_157 = arith.constant 0 : index
    %185 = vector.load %arg3[%c0_155, %c31, %c0_156, %c0_157] : memref<1x32x8x256xf32, #tpu.memory_space<vmem>>, vector<1x1x8x256xf32>
    %186 = vector.shape_cast %185 : vector<1x1x8x256xf32> to vector<1x8x256xf32>
    %c0_158 = arith.constant 0 : index
    %c31_159 = arith.constant 31 : index
    %187 = memref.load %arg2[%c0_158, %c31_159] : memref<1x32xf32, #tpu.memory_space<smem>>
    %188 = vector.broadcast %187 : f32 to vector<1x8x256xf32>
    %189 = arith.mulf %186, %188 : vector<1x8x256xf32>
    %190 = arith.addf %184, %189 : vector<1x8x256xf32>
    %cst = arith.constant dense<0xFF800000> : vector<1x8xf32>
    %191 = vector.multi_reduction <maximumf>, %190, %cst [2] : vector<1x8x256xf32> to vector<1x8xf32>
    %192 = vector.shape_cast %191 : vector<1x8xf32> to vector<1x8x1xf32>
    %193 = vector.broadcast %192 : vector<1x8x1xf32> to vector<1x8x256xf32>
    %194 = arith.subf %190, %193 : vector<1x8x256xf32>
    %195 = math.exp %194 : vector<1x8x256xf32>
    %cst_160 = arith.constant dense<0.000000e+00> : vector<1x8xf32>
    %196 = vector.multi_reduction <add>, %195, %cst_160 [2] : vector<1x8x256xf32> to vector<1x8xf32>
    %197 = vector.shape_cast %196 : vector<1x8xf32> to vector<1x8x1xf32>
    %198 = tpu.reciprocal %197 {approx = true} : vector<1x8x1xf32> -> vector<1x8x1xf32>
    %199 = vector.broadcast %198 : vector<1x8x1xf32> to vector<1x8x256xf32>
    %200 = arith.mulf %195, %199 : vector<1x8x256xf32>
    %c0_161 = arith.constant 0 : index
    %c0_162 = arith.constant 0 : index
    %c0_163 = arith.constant 0 : index
    %c0_164 = arith.constant 0 : index
    %201 = vector.load %arg3[%c0_161, %c0_162, %c0_163, %c0_164] : memref<1x32x8x256xf32, #tpu.memory_space<vmem>>, vector<1x32x8x256xf32>
    %202 = vector.shape_cast %200 : vector<1x8x256xf32> to vector<1x1x8x256xf32>
    %203 = vector.broadcast %202 : vector<1x1x8x256xf32> to vector<1x32x8x256xf32>
    %204 = arith.mulf %201, %203 : vector<1x32x8x256xf32>
    %cst_165 = arith.constant dense<0.000000e+00> : vector<1x32x8xf32>
    %205 = vector.multi_reduction <add>, %204, %cst_165 [3] : vector<1x32x8x256xf32> to vector<1x32x8xf32>
    %206 = tpu.transpose %205, [0, 2, 1] : vector<1x32x8xf32> -> vector<1x8x32xf32>
    %207 = vector.shape_cast %206 : vector<1x8x32xf32> to vector<8x32xf32>
    %c0_166 = arith.constant 0 : index
    %c0_167 = arith.constant 0 : index
    %208 = vector.load %arg4[%c0_166, %c0_167] : memref<32x16xf32, #tpu.memory_space<vmem>>, vector<32x16xf32>
    %cst_168 = arith.constant dense<0.000000e+00> : vector<8x16xf32>
    %209 = tpu.matmul %207, %208, %cst_168 {dimension_numbers = #tpu.dot_dimension_numbers<[1], [0], [0], [1], [0, 0, 1, 1], [], []>} : vector<8x32xf32>, vector<32x16xf32>, vector<8x16xf32> -> vector<8x16xf32>
    %c0_169 = arith.constant 0 : index
    %c0_170 = arith.constant 0 : index
    %210 = vector.load %arg5[%c0_169, %c0_170] : memref<1x16xf32, #tpu.memory_space<vmem>>, vector<1x16xf32>
    %211 = vector.broadcast %210 : vector<1x16xf32> to vector<8x16xf32>
    %212 = arith.addf %209, %211 : vector<8x16xf32>
    %cst_171 = arith.constant 0.000000e+00 : f32
    %213 = vector.broadcast %cst_171 : f32 to vector<8x16xf32>
    %214 = arith.cmpf oge, %212, %213 : vector<8x16xf32>
    %cst_172 = arith.constant 1.000000e-01 : f32
    %215 = vector.broadcast %cst_172 : f32 to vector<8x16xf32>
    %216 = arith.mulf %215, %212 : vector<8x16xf32>
    %217 = arith.select %214, %212, %216 : vector<8x16xi1>, vector<8x16xf32>
    %c0_173 = arith.constant 0 : index
    %c0_174 = arith.constant 0 : index
    %218 = vector.load %arg6[%c0_173, %c0_174] : memref<16x32xf32, #tpu.memory_space<vmem>>, vector<16x32xf32>
    %cst_175 = arith.constant dense<0.000000e+00> : vector<8x32xf32>
    %219 = tpu.matmul %217, %218, %cst_175 {dimension_numbers = #tpu.dot_dimension_numbers<[1], [0], [0], [1], [0, 0, 1, 1], [], []>} : vector<8x16xf32>, vector<16x32xf32>, vector<8x32xf32> -> vector<8x32xf32>
    %c0_176 = arith.constant 0 : index
    %c0_177 = arith.constant 0 : index
    %220 = vector.load %arg7[%c0_176, %c0_177] : memref<1x32xf32, #tpu.memory_space<vmem>>, vector<1x32xf32>
    %221 = vector.broadcast %220 : vector<1x32xf32> to vector<8x32xf32>
    %222 = arith.addf %219, %221 : vector<8x32xf32>
    %cst_178 = arith.constant 0.000000e+00 : f32
    %223 = vector.broadcast %cst_178 : f32 to vector<8x32xf32>
    %224 = arith.subf %223, %222 : vector<8x32xf32>
    %225 = math.exp %224 : vector<8x32xf32>
    %cst_179 = arith.constant 1.000000e+00 : f32
    %226 = vector.broadcast %cst_179 : f32 to vector<8x32xf32>
    %227 = arith.addf %226, %225 : vector<8x32xf32>
    %228 = tpu.reciprocal %227 {approx = true} : vector<8x32xf32> -> vector<8x32xf32>
    %229 = vector.shape_cast %228 : vector<8x32xf32> to vector<1x8x32xf32>
    %230 = tpu.transpose %229, [0, 2, 1] : vector<1x8x32xf32> -> vector<1x32x8xf32>
    %c0_180 = arith.constant 0 : index
    %c0_181 = arith.constant 0 : index
    %c0_182 = arith.constant 0 : index
    %c0_183 = arith.constant 0 : index
    %231 = vector.load %arg3[%c0_180, %c0_181, %c0_182, %c0_183] : memref<1x32x8x256xf32, #tpu.memory_space<vmem>>, vector<1x32x8x256xf32>
    %232 = vector.shape_cast %230 : vector<1x32x8xf32> to vector<1x32x8x1xf32>
    %233 = vector.broadcast %232 : vector<1x32x8x1xf32> to vector<1x32x8x256xf32>
    %234 = arith.mulf %231, %233 : vector<1x32x8x256xf32>
    %c0_184 = arith.constant 0 : index
    %c0_185 = arith.constant 0 : index
    %c0_186 = arith.constant 0 : index
    %c0_187 = arith.constant 0 : index
    %235 = vector.load %arg8[%c0_184, %c0_185, %c0_186, %c0_187] : memref<1x32x8x256xf32, #tpu.memory_space<vmem>>, vector<1x32x8x256xf32>
    tpu.vector_store %arg8[%c0_184, %c0_185, %c0_186, %c0_187], %234 {strides = array<i32>} : memref<1x32x8x256xf32, #tpu.memory_space<vmem>>, vector<1x32x8x256xf32>,
    return
  }
  func.func @transform_0(%arg0: i32, %arg1: i32) -> (i32, i32) {
    %c0_i32 = arith.constant 0 : i32
    %c0_i32_0 = arith.constant 0 : i32
    %c0_i32_1 = arith.constant 0 : i32
    return %c0_i32, %c0_i32_0 : i32, i32
  }
  func.func @transform_1(%arg0: i32, %arg1: i32) -> (i32, i32, i32, i32) {
    %c0_i32 = arith.constant 0 : i32
    %c0_i32_0 = arith.constant 0 : i32
    %c0_i32_1 = arith.constant 0 : i32
    return %arg0, %c0_i32, %arg1, %c0_i32_0 : i32, i32, i32, i32
  }
  func.func @transform_2(%arg0: i32, %arg1: i32) -> (i32, i32) {
    %c0_i32 = arith.constant 0 : i32
    %c0_i32_0 = arith.constant 0 : i32
    %c0_i32_1 = arith.constant 0 : i32
    return %c0_i32, %c0_i32_0 : i32, i32
  }
  func.func @transform_3(%arg0: i32, %arg1: i32) -> (i32, i32) {
    %c0_i32 = arith.constant 0 : i32
    %c0_i32_0 = arith.constant 0 : i32
    %c0_i32_1 = arith.constant 0 : i32
    return %c0_i32, %c0_i32_0 : i32, i32
  }
  func.func @transform_4(%arg0: i32, %arg1: i32) -> (i32, i32) {
    %c0_i32 = arith.constant 0 : i32
    %c0_i32_0 = arith.constant 0 : i32
    %c0_i32_1 = arith.constant 0 : i32
    return %c0_i32, %c0_i32_0 : i32, i32
  }
  func.func @transform_5(%arg0: i32, %arg1: i32) -> (i32, i32) {
    %c0_i32 = arith.constant 0 : i32
    %c0_i32_0 = arith.constant 0 : i32
    %c0_i32_1 = arith.constant 0 : i32
    return %c0_i32, %c0_i32_0 : i32, i32
  }
  func.func @transform_6(%arg0: i32, %arg1: i32) -> (i32, i32, i32, i32) {
    %c0_i32 = arith.constant 0 : i32
    %c0_i32_0 = arith.constant 0 : i32
    %c0_i32_1 = arith.constant 0 : i32
    return %arg0, %c0_i32, %arg1, %c0_i32_0 : i32, i32, i32, i32
  }
}

</mosaic_0001>

<bundles_post_ra>
// kernel: tpu_custom_call.1
= control target key start
LH: loop header
LB: loop body
LE: loop exit
PB: predicated region body
PF: predicated region fallthrough
CT: control target
= control target key end

     0   :  { %s3144_s0 = inlined_call_operand.vmem [shape: f32[1,32], index: 0, kind: input, shape index: {}]   ;;  %s3145_s1 = inlined_call_operand.hbm [shape: f32[2,32,8,256], index: 1, kind: input, shape index: {}]   ;;  %s3146_s2 = inlined_call_operand.vmem [shape: f32[32,16], index: 2, kind: input, shape index: {}]   ;;  %s3147_s3 = inlined_call_operand.vmem [shape: f32[1,16], index: 3, kind: input, shape index: {}]   ;;  %s3148_s4 = inlined_call_operand.vmem [shape: f32[16,32], index: 4, kind: input, shape index: {}]   ;;  %s3149_s5 = inlined_call_operand.vmem [shape: f32[1,32], index: 5, kind: input, shape index: {}]   ;;  %s3150_s6 = inlined_call_operand.hbm [shape: f32[2,32,8,256], index: 6, kind: output, shape index: {}]  }
   0x1   :  { %3178 = sst [smem:[#allocation34_spill]] %s3144_s0 }
   0x2   :  { %11 = vsyncpa [#allocation5], 0 }
   0x3   :  { %12 = vsyncpa [#allocation3], 0 }
   0x4   :  { %14 = vsyncpa [#allocation3 + $0x1], 0 }
   0x5   :  { %15 = vsyncpa [#allocation4], 0 }
   0x6   :  { %17 = vsyncpa [#allocation4 + $0x1], 0  ;;  %s2217_s21 = smov 0   ;;  %s2219_s22 = smov 0  }
   0x7   :  { %s2221_s23 = smov 0   ;;  %s2223_s24 = smov 0  }
   0x8   :  { %s2225_s25 = smov 0   ;;  %s2227_s26 = smov 0  }
   0x9 LB: > { %s1734_s27 = sadd.s32 4294967295, %s2170_s26   ;;  %s1735_s28 = sadd.s32 4294967294, %s2170_s26   ;;  %s2170_s26 = sphi %s2227_s26, %s23_s26   ;;  %s2166_s25 = sphi %s2225_s25, %s3245_s25   ;;  %s2162_s24 = sphi %s2223_s24, %s3244_s24   ;;  %s2158_s23 = sphi %s2221_s23, %s3243_s23   ;;  %s2154_s22 = sphi %s2219_s22, %s3242_s22   ;;  %s2150_s21 = sphi %s2217_s21, %s3241_s21  }
   0xa   : > { %p72_p0 = scmp.ne.s32.totalorder %s2158_s23, %s2154_s22  ;;  %p73_p1 = scmp.eq.s32.totalorder %s2170_s26, 0 }
   0xb   : > { %p78_p2 = scmp.ne.s32.totalorder %s2154_s22, %s2150_s21  ;;  %p2255_p3 = scmp.eq.s32.totalorder %s1734_s27, 0 }
   0xc   : > { %p188_p4 = scmp.eq.s32.totalorder %s1734_s27, 1  ;;  %p2259_p5 = por %p73_p1, %p72_p0 }
   0xd   : > { %s3179_s30 = scalar_select %p2255_p3, 1, 0 }
   0xe   : > { %p194_p6 = scmp.eq.s32.totalorder %s1735_s28, 1  ;;  %p2265_p7 = por %p2255_p3, %p78_p2 }
   0xf   : > { %p2269_p8 = por %p188_p4, %p72_p0  ;;  %p1736_p10 = scmp.ge.s32.totalorder %s2170_s26, 1 }
  0x10   : > { %s3181_s8 = scalar_select %p2265_p7, 1, 0 }
  0x11   : > { %s3182_s9 = scalar_select %p2269_p8, 1, 0 }
  0x12   : > { %p2273_p9 = por %p194_p6, %p78_p2  ;;  %p201_p11 = scmp.lt.s32.totalorder %s2170_s26, 3 }
  0x13   : > { %s3184_s0 = sld [smem:[#allocation34_spill]]  ;;  %p1906_p0 = scmp.lt.s32.totalorder %s2170_s26, 2 }
  0x14   : > { %s3183_s10 = scalar_select %p2273_p9, 1, 0 }
  0x15   : > { %p2282_p12 = pnand %p1736_p10, %p201_p11  ;;  %p2292_p2 = pnand %p1906_p0, %p2259_p5 }
  0x16   : > { %s35_s17 = sadd.s32 1, %s2166_s25  ;;  %s237_s19 = sand.u32 1, %s2158_s23  }
  0x17   : > { %p1893_p1 = pneg %p2282_p12  ;;  %p2303_p6 = scmp.ge.s32.totalorder %s35_s17, 2 }
  0x19   : > { %s214_s13 = sshll.u32 %s3184_s0, 4  ;;  %p2298_p4 = pnand %p1893_p1, %p2255_p3  ;;  %s215_s13 = int_to_ptr.vmem [resolvable:$true] %s214_s13 }
  0x1a   : > { %s2039_s20 = scalar_lea.vmem %s215_s13, 16  ;;  %p2047_p13 = scmp.lt.s32.totalorder %s215_s13, %s215_s13 }
  0x1b   : > { %p2040_p10 = scmp.ne.s32.totalorder %s215_s13, %s2039_s20  ;;  %p2041_p11 = pneg %p2298_p4 }
  0x1c   : > { %p2048_p9 = scmp.lt.s32.totalorder %s2039_s20, %s2039_s20 }
  0x1d   : > { %p2042_p5 = pnand %p2041_p11, %p2040_p10 }
  0x1e   : > { %p2049_p8 = por %p2048_p9, %p2047_p13 }
  0x1f   : > { %p2043_p0 = pneg %p2042_p5 }
  0x21   : > { %p2050_p1 = pnand %p2049_p8, %p2043_p0 }
  0x23   : > { %2053 = shalt.err (!%p2050_p1)
}
  0x24   : > { %s2172_s27 = smov [#allocation2]   ;;  %s3247_s17 = smov (%p2303_p6, %s35_s17), 0 }
  0x25   : > { %1896 = dma.vmem_to_smem (!%p2298_p4), %s215_s13, 16, %s2172_s27, [#allocation5]  }
  0x26   : > { %s1739_s28 = sshll.u32 %s237_s19, 9  ;;  %s60_s7 = ssub.s32 %s2166_s25, %s3247_s17 }
  0x27   : > { %p63_p9 = scmp.eq.s32.totalorder %s60_s7, 0  ;;  %s1848_s11 = sshll.u32 %s2166_s25, 13 }
  0x28   : > { %s2322_s16 = scalar_lea.hbm %s3145_s1, %s1848_s11  ;;  %s241_s29 = scalar_lea.vmem [#allocation6], %s1739_s28 }
  0x29   : > { %s250_s0 = sshll.u32 %s241_s29, 4  ;;  %s3189_s13 = sadd.s32 1, %s2158_s23  ;;  %s2329_s0 = int_to_ptr.vmem [resolvable:$true] %s250_s0 }
  0x2a   : > { %s2327_s18 = scalar_select %p63_p9, %s2158_s23, %s3189_s13  }
  0x2b   : > { %s2331_s27 = scalar_lea.sflag [#allocation3], %s237_s19  ;;  %s2054_s7 = scalar_lea.hbm %s2322_s16, 8192 }
  0x2c   : > { %p2055_p8 = scmp.ne.s32.totalorder %s2322_s16, %s2054_s7  ;;  %p2056_p13 = pneg %p2292_p2 }
  0x2d   : > { %s2059_s28 = scalar_lea.hbm %s3145_s1, 16384  ;;  %p2060_p10 = scmp.lt.u32.totalorder %s2322_s16, %s3145_s1 }
  0x2e   : > { %p2057_p4 = pnand %p2056_p13, %p2055_p8  ;;  %p2061_p11 = scmp.lt.u32.totalorder %s2059_s28, %s2054_s7 }
  0x2f   : > { %p2063_p0 = scmp.lt.u32.totalorder %s2054_s7, %s2322_s16 }
  0x30   : > { %p2058_p6 = pneg %p2057_p4  ;;  %p2062_p5 = por %p2061_p11, %p2060_p10 }
  0x32   : > { %p2064_p1 = por %p2063_p0, %p2062_p5 }
  0x34   : > { %p2065_p9 = pnand %p2064_p1, %p2058_p6 }
  0x36   : > { %2068 = shalt.err (!%p2065_p9)
}
  0x37   : > { %s2069_s19 = scalar_lea.vmem %s2329_s0, 8192  ;;  %s2173_s13 = smov [#allocation6]  }
  0x38   : > { %p2070_p8 = scmp.ne.s32.totalorder %s2329_s0, %s2069_s19  ;;  %s2074_s11 = sshll.u32 %s2173_s13, 4  ;;  %s2075_s11 = int_to_ptr.vmem [resolvable:$false] %s2074_s11 }
  0x39   : > { %s2076_s12 = scalar_lea.vmem %s2075_s11, 16384  ;;  %p2077_p3 = scmp.lt.s32.totalorder %s2329_s0, %s2075_s11 }
  0x3a   : > { %p2072_p4 = pnand %p2070_p8, %p2056_p13  ;;  %p2078_p10 = scmp.lt.s32.totalorder %s2076_s12, %s2069_s19 }
  0x3c   : > { %p2073_p7 = pneg %p2072_p4  ;;  %p2079_p11 = por %p2078_p10, %p2077_p3 }
  0x3e   : > { %p2080_p5 = pnand %p2079_p11, %p2073_p7 }
  0x40   : > { %2083 = shalt.err (!%p2080_p5)
}
  0x41   : > { %s2174_s7 = smov 256   ;;  %s2175_s28 = smov 16  }
  0x42   : > { %1900 = dma.hbm_to_vmem [thread:$0]  (!%p2292_p2), %s2322_s16, 8192, %s2329_s0, %s2331_s27, %s2174_s7, %s2174_s7, %s2175_s28  }
  0x43   : > { %262 = sbr.rel (%p2282_p12) target bundleno = 1588 (0x634), region = 44 }
  0x4a   : > { %p3190_p13 = scmp.ne.s32.totalorder %s3179_s30, 0 }
  0x4c   : > { %2137 = dma.done.wait (%p3190_p13), [#allocation5], 16  }
  0x4d   : > { %2139 = vsyncadd (%p3190_p13), [#allocation5], 4294967280  ;;  %s2366_s29 = sand.u32 1, %s2154_s22   ;;  %p3191_p3 = scmp.ne.s32.totalorder %s3181_s8, 0 }
  0x4e   : > { %s1744_s20 = sshll.u32 %s2366_s29, 9  ;;  %s269_s19 = scalar_lea.sflag [#allocation3], %s2366_s29 }
  0x4f   : > { %s2372_s0 = scalar_lea.vmem [#allocation6], %s1744_s20 }
  0x50   : > { %2141 = dma.done.wait (%p3191_p3), %s269_s19, 8192  }
  0x51   : > { %2143 = vsyncadd (%p3191_p3), %s269_s19, 4294959104 }
  0x52   : > { %277 = sfence }
  0x53   : > { %s304_s30 = sld [smem:[#allocation2]]  ;;  %s1748_s14 = sld [smem:[#allocation2 + $0x1]]  ;;  %v2381_v0 = vld [vmem:[%s2372_s0] sm:$0xff]  ;;  %v2384_v1 = vld [vmem:[%s2372_s0 + $0x8] sm:$0xff]  ;;  %v2389_v2 = vld [vmem:[%s2372_s0 + $0x10] sm:$0xff]  ;;  %vm2177_vm0 = vmmov 0  }
  0x54   : > { %s1751_s15 = sld [smem:[#allocation2 + $0x2]]  ;;  %s1754_s16 = sld [smem:[#allocation2 + $0x3]]  ;;  %v2392_v3 = vld [vmem:[%s2372_s0 + $0x18] sm:$0xff]  ;;  %v2397_v5 = vld [vmem:[%s2372_s0 + $0x20] sm:$0xff]  ;;  %v2400_v6 = vld [vmem:[%s2372_s0 + $0x28] sm:$0xff]  ;;  %vm988_vm1 = vcmask 1041409  }
  0x55   : > { %s2378_s27 = sld [smem:[#allocation2 + $0x4]]  ;;  %s2386_s8 = sld [smem:[#allocation2 + $0x5]]  ;;  %v2403_v7 = vld [vmem:[%s2372_s0 + $0x30] sm:$0xff]  ;;  %v2408_v11 = vld [vmem:[%s2372_s0 + $0x38] sm:$0xff]  ;;  %v2418_v19 = vld [vmem:[%s2372_s0 + $0x40] sm:$0xff]  ;;  %vm990_vm2 = vcmask 1042434  }
  0x56   : > { %s2394_s13 = sld [smem:[#allocation2 + $0x6]]  ;;  %s2410_s11 = sld [smem:[#allocation2 + $0x7]]  ;;  %v2421_v20 = vld [vmem:[%s2372_s0 + $0x48] sm:$0xff]  ;;  %v2428_v25 = vld [vmem:[%s2372_s0 + $0x50] sm:$0xff]  ;;  %v2431_v26 = vld [vmem:[%s2372_s0 + $0x58] sm:$0xff]  ;;  %vm992_vm3 = vcmask 1043459  }
  0x57   : > { %s2423_s12 = sld [smem:[#allocation2 + $0x8]]  ;;  %s2434_s7 = sld [smem:[#allocation2 + $0x9]]  ;;  %v2439_v32 = vld [vmem:[%s2372_s0 + $0x60] sm:$0xff]  ;;  %v2442_v33 = vld [vmem:[%s2372_s0 + $0x68] sm:$0xff]  ;;  %v2450_v39 = vld [vmem:[%s2372_s0 + $0x70] sm:$0xff]  ;;  %vm994_vm4 = vcmask 1044484  }
  0x58   : > { %s2445_s28 = sld [smem:[#allocation2 + $0xa]]  ;;  %v2453_v40 = vld [vmem:[%s2372_s0 + $0x78] sm:$0xff]  ;;  %s2456_s19 = sld [smem:[#allocation2 + $0xb]]  ;;  %v2461_v46 = vld [vmem:[%s2372_s0 + $0x80] sm:$0xff]  ;;  %v2464_v47 = vld [vmem:[%s2372_s0 + $0x88] sm:$0xff]  ;;  %vm996_vm5 = vcmask 1045509  }
  0x59   : > { %v305_v4 = vstv %s304_s30  ;;  %v312_v10 = vstv %s1748_s14  ;;  %s2467_s30 = sld [smem:[#allocation2 + $0xc]]  ;;  %v2472_v53 = vld [vmem:[%s2372_s0 + $0x90] sm:$0xff]  ;;  %v2475_v54 = vld [vmem:[%s2372_s0 + $0x98] sm:$0xff]  ;;  %s2478_s14 = sld [smem:[#allocation2 + $0xd]]  ;;  %vm998_vm6 = vcmask 1046534   ;;  %vm1000_vm7 = vcmask 1047559  }
  0x5a   : > { %v306_v8 = vmul.f32 %v305_v4, %v2381_v0  ;;  %v307_v9 = vmul.f32 %v305_v4, %v2384_v1  ;;  %v313_v12 = vmul.f32 %v2389_v2, %v312_v10  ;;  %v314_v13 = vmul.f32 %v2392_v3, %v312_v10  ;;  %v2483_v60 = vld [vmem:[%s2372_s0 + $0xa0] sm:$0xff]  ;;  %v2486_v61 = vld [vmem:[%s2372_s0 + $0xa8] sm:$0xff]  ;;  %v2494_v10 = vld [vmem:[%s2372_s0 + $0xb0] sm:$0xff]  ;;  %p3238_p12 = scmp.ne.s32.totalorder %s3182_s9, 0 }
  0x5b   : > { %v321_v14 = vstv %s1751_s15  ;;  %v330_v15 = vstv %s1754_s16  ;;  %v339_v24 = vstv %s2378_s27  ;;  %v348_v27 = vstv %s2386_s8  ;;  %s2489_s15 = sld [smem:[#allocation2 + $0xe]]  ;;  %s2500_s16 = sld [smem:[#allocation2 + $0xf]] }
  0x5c   : > { %v322_v16 = vmul.f32 %v2397_v5, %v321_v14  ;;  %v323_v17 = vmul.f32 %v2400_v6, %v321_v14  ;;  %v331_v18 = vmul.f32 %v2403_v7, %v330_v15  ;;  %v315_v21 = vadd.f32 %v313_v12, %v306_v8  ;;  %v2497_v12 = vld [vmem:[%s2372_s0 + $0xb8] sm:$0xff]  ;;  %s2511_s27 = sld [smem:[#allocation2 + $0x10]]  ;;  %s2522_s8 = sld [smem:[#allocation2 + $0x11]] }
  0x5d   : > { %v316_v22 = vadd.f32 %v314_v13, %v307_v9  ;;  %v332_v23 = vmul.f32 %v2408_v11, %v330_v15  ;;  %v340_v30 = vmul.f32 %v2418_v19, %v339_v24  ;;  %v341_v31 = vmul.f32 %v2421_v20, %v339_v24 }
  0x5e   : > { %v324_v28 = vadd.f32 %v322_v16, %v315_v21  ;;  %v357_v34 = vstv %s2394_s13  ;;  %v349_v37 = vmul.f32 %v2428_v25, %v348_v27  ;;  %v350_v38 = vmul.f32 %v2431_v26, %v348_v27  ;;  %v2508_v21 = vld [vmem:[%s2372_s0 + $0xc8] sm:$0xff]  ;;  %s2533_s13 = sld [smem:[#allocation2 + $0x12]] }
  0x5f   : > { %v325_v29 = vadd.f32 %v323_v17, %v316_v22  ;;  %v366_v41 = vstv %s2410_s11  ;;  %v358_v44 = vmul.f32 %v2439_v32, %v357_v34  ;;  %v359_v45 = vmul.f32 %v2442_v33, %v357_v34  ;;  %s2544_s11 = sld [smem:[#allocation2 + $0x13]] }
  0x60   : > { %v333_v35 = vadd.f32 %v331_v18, %v324_v28  ;;  %v375_v48 = vstv %s2423_s12  ;;  %v367_v51 = vmul.f32 %v2450_v39, %v366_v41  ;;  %v368_v52 = vmul.f32 %v2453_v40, %v366_v41  ;;  %v2505_v18 = vld [vmem:[%s2372_s0 + $0xc0] sm:$0xff]  ;;  %v2530_v41 = vld [vmem:[%s2372_s0 + $0xe8] sm:$0xff]  ;;  %s2555_s12 = sld [smem:[#allocation2 + $0x14]] }
  0x61   : > { %v334_v36 = vadd.f32 %v332_v23, %v325_v29  ;;  %v384_v55 = vstv %s2434_s7  ;;  %v376_v58 = vmul.f32 %v2461_v46, %v375_v48  ;;  %v377_v59 = vmul.f32 %v2464_v47, %v375_v48  ;;  %v2516_v29 = vld [vmem:[%s2372_s0 + $0xd0] sm:$0xff]  ;;  %3192 = vst [vmem:[#allocation11_spill] sm:$0xff] %v2530_v41  ;;  %s2566_s7 = sld [smem:[#allocation2 + $0x15]] }
  0x62   : > { %v342_v42 = vadd.f32 %v340_v30, %v333_v35  ;;  %v393_v62 = vstv %s2445_s28  ;;  %v385_v8 = vmul.f32 %v2472_v53, %v384_v55  ;;  %v386_v9 = vmul.f32 %v2475_v54, %v384_v55  ;;  %v2519_v30 = vld [vmem:[%s2372_s0 + $0xd8] sm:$0xff]  ;;  %s2577_s28 = sld [smem:[#allocation2 + $0x16]] }
  0x63   : > { %v343_v43 = vadd.f32 %v341_v31, %v334_v36  ;;  %v402_v13 = vstv %s2456_s19  ;;  %v394_v16 = vmul.f32 %v2483_v60, %v393_v62  ;;  %v395_v17 = vmul.f32 %v2486_v61, %v393_v62  ;;  %s2588_s19 = sld [smem:[#allocation2 + $0x17]] }
  0x64   : > { %v351_v49 = vadd.f32 %v349_v37, %v342_v42  ;;  %v411_v22 = vstv %s2467_s30  ;;  %v403_v27 = vmul.f32 %v2494_v10, %v402_v13  ;;  %v404_v28 = vmul.f32 %v2497_v12, %v402_v13  ;;  %v2560_v13 = vld [vmem:[%s2372_s0 + $0x110] sm:$0xff]  ;;  %s2599_s30 = sld [smem:[#allocation2 + $0x18]] }
  0x65   : > { %v352_v50 = vadd.f32 %v350_v38, %v343_v43  ;;  %v420_v31 = vstv %s2478_s14  ;;  %v412_v36 = vmul.f32 %v2505_v18, %v411_v22  ;;  %v413_v37 = vmul.f32 %v2508_v21, %v411_v22  ;;  %v2527_v38 = vld [vmem:[%s2372_s0 + $0xe0] sm:$0xff]  ;;  %s2610_s14 = sld [smem:[#allocation2 + $0x19]] }
  0x66   : > { %v360_v56 = vadd.f32 %v358_v44, %v351_v49  ;;  %v429_v42 = vstv %s2489_s15  ;;  %v422_v48 = vmul.f32 %v2519_v30, %v420_v31  ;;  %v2538_v49 = vld [vmem:[%s2372_s0 + $0xf0] sm:$0xff]  ;;  %v447_v62 = vstv %s2511_s27  ;;  %s2621_s15 = sld [smem:[#allocation2 + $0x1a]]  ;;  %s2643_s27 = sld [smem:[#allocation2 + $0x1c]] }
  0x67   : > { %v361_v57 = vadd.f32 %v359_v45, %v352_v50  ;;  %v421_v45 = vmul.f32 %v2516_v29, %v420_v31  ;;  %3193 = vst [vmem:[#allocation12_spill] sm:$0xff] %v2538_v49  ;;  %v2541_v50 = vld [vmem:[%s2372_s0 + $0xf8] sm:$0xff]  ;;  %vm1070_vm8 = vcmask 261120   ;;  %vm1156_vm10 = vcmask 130048  }
  0x68   : > { %v369_v63 = vadd.f32 %v367_v51, %v360_v56  ;;  %3194 = vst [vmem:[#allocation13_spill] sm:$0xff] %v2541_v50  ;;  %v438_v51 = vstv %s2500_s16  ;;  %v430_v56 = vmul.f32 %v2527_v38, %v429_v42  ;;  %s2632_s16 = sld [smem:[#allocation2 + $0x1b]] }
  0x69   : > { %v370_v4 = vadd.f32 %v368_v52, %v361_v57  ;;  %v431_v57 = vmul.f32 %v2530_v41, %v429_v42  ;;  %v2585_v42 = vld [vmem:[%s2372_s0 + $0x138] sm:$0xff] }
  0x6a   : > { %v378_v14 = vadd.f32 %v376_v58, %v369_v63  ;;  %v2549_v58 = vld [vmem:[%s2372_s0 + $0x100] sm:$0xff]  ;;  %3196 = vst [vmem:[#allocation15_spill] sm:$0xff] %v2585_v42 }
  0x6b   : > { %v379_v15 = vadd.f32 %v377_v59, %v370_v4  ;;  %v2552_v59 = vld [vmem:[%s2372_s0 + $0x108] sm:$0xff]  ;;  %v448_v22 = vmul.f32 %v2549_v58, %v447_v62 }
  0x6c   : > { %v387_v23 = vadd.f32 %v385_v8, %v378_v14  ;;  %v439_v8 = vmul.f32 %v2538_v49, %v438_v51  ;;  %v2563_v14 = vld [vmem:[%s2372_s0 + $0x118] sm:$0xff] }
  0x6d   : > { %v388_v24 = vadd.f32 %v386_v9, %v379_v15  ;;  %v440_v9 = vmul.f32 %v2541_v50, %v438_v51  ;;  %v456_v15 = vstv %s2522_s8  ;;  %s2654_s8 = sld [smem:[#allocation2 + $0x1d]] }
  0x6e   : > { %v396_v34 = vadd.f32 %v394_v16, %v387_v23  ;;  %v449_v23 = vmul.f32 %v2552_v59, %v447_v62 }
  0x6f   : > { %v397_v35 = vadd.f32 %v395_v17, %v388_v24  ;;  %v2571_v24 = vld [vmem:[%s2372_s0 + $0x120] sm:$0xff] }
  0x70   : > { %v405_v43 = vadd.f32 %v403_v27, %v396_v34  ;;  %v2574_v27 = vld [vmem:[%s2372_s0 + $0x128] sm:$0xff] }
  0x71   : > { %v406_v44 = vadd.f32 %v404_v28, %v397_v35  ;;  %v465_v28 = vstv %s2533_s13  ;;  %v457_v35 = vmul.f32 %v2560_v13, %v456_v15  ;;  %s2665_s13 = sld [smem:[#allocation2 + $0x1e]] }
  0x72   : > { %v414_v52 = vadd.f32 %v412_v36, %v405_v43  ;;  %v458_v36 = vmul.f32 %v2563_v14, %v456_v15  ;;  %v474_v43 = vstv %s2544_s11  ;;  %v467_v51 = vmul.f32 %v2574_v27, %v465_v28  ;;  %s2676_s11 = sld [smem:[#allocation2 + $0x1f]] }
  0x73   : > { %v415_v55 = vadd.f32 %v413_v37, %v406_v44  ;;  %v2582_v37 = vld [vmem:[%s2372_s0 + $0x130] sm:$0xff]  ;;  %v492_v15 = vstv %s2566_s7 }
  0x74   : > { %v423_v63 = vadd.f32 %v421_v45, %v414_v52  ;;  %3195 = vst [vmem:[#allocation14_spill] sm:$0xff] %v2582_v37  ;;  %v2593_v52 = vld [vmem:[%s2372_s0 + $0x140] sm:$0xff] }
  0x75   : > { %v424_v4 = vadd.f32 %v422_v48, %v415_v55  ;;  %v466_v48 = vmul.f32 %v2571_v24, %v465_v28  ;;  %3197 = vst [vmem:[#allocation16_spill] sm:$0xff] %v2593_v52  ;;  %v2596_v55 = vld [vmem:[%s2372_s0 + $0x148] sm:$0xff]  ;;  %v2615_v28 = vld [vmem:[%s2372_s0 + $0x160] sm:$0xff] }
  0x76   : > { %v432_v16 = vadd.f32 %v430_v56, %v423_v63  ;;  %3198 = vst [vmem:[#allocation17_spill] sm:$0xff] %v2596_v55  ;;  %v483_v56 = vstv %s2555_s12  ;;  %v475_v63 = vmul.f32 %v2582_v37, %v474_v43  ;;  %3201 = vst [vmem:[#allocation20_spill] sm:$0xff] %v2615_v28 }
  0x77   : > { %v433_v17 = vadd.f32 %v431_v57, %v424_v4  ;;  %v476_v4 = vmul.f32 %v2585_v42, %v474_v43  ;;  %v2711_v42 = vld [vmem:[%s2372_s0 + $0x1f8] sm:$0xff] }
  0x78   : > { %v441_v31 = vadd.f32 %v439_v8, %v432_v16  ;;  %v2604_v8 = vld [vmem:[%s2372_s0 + $0x150] sm:$0xff] }
  0x79   : > { %v442_v34 = vadd.f32 %v440_v9, %v433_v17  ;;  %3199 = vst [vmem:[#allocation18_spill] sm:$0xff] %v2604_v8  ;;  %v2607_v9 = vld [vmem:[%s2372_s0 + $0x158] sm:$0xff]  ;;  %v493_v43 = vmul.f32 %v2604_v8, %v492_v15 }
  0x7a   : > { %v450_v44 = vadd.f32 %v448_v22, %v441_v31  ;;  %3200 = vst [vmem:[#allocation19_spill] sm:$0xff] %v2607_v9  ;;  %v484_v22 = vmul.f32 %v2593_v52, %v483_v56  ;;  %v2618_v31 = vld [vmem:[%s2372_s0 + $0x168] sm:$0xff] }
  0x7b   : > { %v451_v45 = vadd.f32 %v449_v23, %v442_v34  ;;  %v485_v23 = vmul.f32 %v2596_v55, %v483_v56  ;;  %3202 = vst [vmem:[#allocation21_spill] sm:$0xff] %v2618_v31  ;;  %v501_v34 = vstv %s2577_s28 }
  0x7c   : > { %v459_v57 = vadd.f32 %v457_v35, %v450_v44  ;;  %v494_v44 = vmul.f32 %v2607_v9, %v492_v15  ;;  %v2640_v15 = vld [vmem:[%s2372_s0 + $0x188] sm:$0xff] }
  0x7d   : > { %v460_v62 = vadd.f32 %v458_v36, %v451_v45  ;;  %v2626_v45 = vld [vmem:[%s2372_s0 + $0x170] sm:$0xff] }
  0x7e   : > { %v468_v16 = vadd.f32 %v466_v48, %v459_v57  ;;  %3203 = vst [vmem:[#allocation22_spill] sm:$0xff] %v2626_v45  ;;  %v2629_v48 = vld [vmem:[%s2372_s0 + $0x178] sm:$0xff] }
  0x7f   : > { %v469_v17 = vadd.f32 %v467_v51, %v460_v62  ;;  %3204 = vst [vmem:[#allocation23_spill] sm:$0xff] %v2629_v48  ;;  %v510_v51 = vstv %s2588_s19  ;;  %v502_v62 = vmul.f32 %v2615_v28, %v501_v34 }
  0x80   : > { %v477_v35 = vadd.f32 %v475_v63, %v468_v16  ;;  %v503_v63 = vmul.f32 %v2618_v31, %v501_v34  ;;  %v519_v16 = vstv %s2599_s30  ;;  %v511_v49 = vmul.f32 %v2626_v45, %v510_v51  ;;  %v2651_v34 = vld [vmem:[%s2372_s0 + $0x198] sm:$0xff]  ;;  %s2962_s30 = scalar_lea.vmem [#allocation7], %s1744_s20  ;;  %s1849_s20 = sshll.u32 %s2162_s24, 13 }
  0x81   : > { %v478_v36 = vadd.f32 %v476_v4, %v469_v17  ;;  %v2637_v4 = vld [vmem:[%s2372_s0 + $0x180] sm:$0xff]  ;;  %3206 = vst [vmem:[#allocation25_spill] sm:$0xff] %v2651_v34  ;;  %s1620_s24 = scalar_lea.sflag [#allocation4], %s2366_s29 }
  0x82   : > { %v486_v56 = vadd.f32 %v484_v22, %v477_v35  ;;  %v512_v22 = vmul.f32 %v2629_v48, %v510_v51  ;;  %v528_v35 = vstv %s2610_s14  ;;  %v520_v28 = vmul.f32 %v2637_v4, %v519_v16  ;;  %v2662_v51 = vld [vmem:[%s2372_s0 + $0x1a8] sm:$0xff]  ;;  %s1635_s14 = sshll.u32 %s2962_s30, 4  ;;  %s3091_s14 = int_to_ptr.vmem [resolvable:$true] %s1635_s14 }
  0x83   : > { %v487_v57 = vadd.f32 %v485_v23, %v478_v36  ;;  %v2648_v23 = vld [vmem:[%s2372_s0 + $0x190] sm:$0xff]  ;;  %3208 = vst [vmem:[#allocation27_spill] sm:$0xff] %v2662_v51 }
  0x84   : > { %v495_v17 = vadd.f32 %v493_v43, %v486_v56  ;;  %3205 = vst [vmem:[#allocation24_spill] sm:$0xff] %v2648_v23  ;;  %v521_v43 = vmul.f32 %v2640_v15, %v519_v16  ;;  %v537_v56 = vstv %s2621_s15  ;;  %v529_v45 = vmul.f32 %v2648_v23, %v528_v35 }
  0x85   : > { %v496_v50 = vadd.f32 %v494_v44, %v487_v57  ;;  %v2659_v44 = vld [vmem:[%s2372_s0 + $0x1a0] sm:$0xff]  ;;  %v546_v16 = vstv %s2632_s16 }
  0x86   : > { %v504_v36 = vadd.f32 %v502_v62, %v495_v17  ;;  %3207 = vst [vmem:[#allocation26_spill] sm:$0xff] %v2659_v44  ;;  %v2670_v62 = vld [vmem:[%s2372_s0 + $0x1b0] sm:$0xff]  ;;  %v538_v52 = vmul.f32 %v2659_v44, %v537_v56 }
  0x87   : > { %v505_v31 = vadd.f32 %v503_v63, %v496_v50  ;;  %v530_v50 = vmul.f32 %v2651_v34, %v528_v35  ;;  %3209 = vst [vmem:[#allocation28_spill] sm:$0xff] %v2670_v62  ;;  %v2673_v63 = vld [vmem:[%s2372_s0 + $0x1b8] sm:$0xff]  ;;  %v555_v35 = vstv %s2643_s27  ;;  %v547_v8 = vmul.f32 %v2670_v62, %v546_v16  ;;  %v2708_v44 = vld [vmem:[%s2372_s0 + $0x1f0] sm:$0xff]  ;;  %s3089_s27 = scalar_lea.hbm %s3150_s6, %s1849_s20 }
  0x88   : > { %v513_v57 = vadd.f32 %v511_v49, %v504_v36  ;;  %3210 = vst [vmem:[#allocation29_spill] sm:$0xff] %v2673_v63  ;;  %v539_v49 = vmul.f32 %v2662_v51, %v537_v56  ;;  %v564_v56 = vstv %s2654_s8  ;;  %s2084_s8 = scalar_lea.vmem %s3091_s14, 8192 }
  0x89   : > { %v514_v48 = vadd.f32 %v512_v22, %v505_v31  ;;  %v2681_v31 = vld [vmem:[%s2372_s0 + $0x1c0] sm:$0xff]  ;;  %v2684_v22 = vld [vmem:[%s2372_s0 + $0x1c8] sm:$0xff]  ;;  %p2085_p7 = scmp.ne.s32.totalorder %s3091_s14, %s2084_s8 }
  0x8a   : > { %v522_v17 = vadd.f32 %v520_v28, %v513_v57  ;;  %3211 = vst [vmem:[#allocation30_spill] sm:$0xff] %v2681_v31  ;;  %3212 = vst [vmem:[#allocation31_spill] sm:$0xff] %v2684_v22  ;;  %v548_v28 = vmul.f32 %v2673_v63, %v546_v16  ;;  %v556_v23 = vmul.f32 %v2681_v31, %v555_v35 }
  0x8b   : > { %v523_v55 = vadd.f32 %v521_v43, %v514_v48  ;;  %v2690_v48 = vld [vmem:[%s2372_s0 + $0x1d0] sm:$0xff]  ;;  %v2693_v43 = vld [vmem:[%s2372_s0 + $0x1d8] sm:$0xff]  ;;  %v557_v51 = vmul.f32 %v2684_v22, %v555_v35  ;;  %p2086_p2 = pnand %p2085_p7, %p3238_p12 }
  0x8c   : > { %v531_v36 = vadd.f32 %v529_v45, %v522_v17  ;;  %3213 = vst [vmem:[#allocation32_spill] sm:$0xff] %v2690_v48  ;;  %3214 = vst [vmem:[#allocation33_spill] sm:$0xff] %v2693_v43  ;;  %v2699_v45 = vld [vmem:[%s2372_s0 + $0x1e0] sm:$0xff]  ;;  %v565_v63 = vmul.f32 %v2690_v48, %v564_v56  ;;  %v566_v62 = vmul.f32 %v2693_v43, %v564_v56 }
  0x8d   : > { %v532_v9 = vadd.f32 %v530_v50, %v523_v55  ;;  %v2702_v55 = vld [vmem:[%s2372_s0 + $0x1e8] sm:$0xff]  ;;  %v573_v50 = vstv %s2665_s13  ;;  %p2087_p6 = pneg %p2086_p2  ;;  %s2179_s13 = smov [#allocation7]  }
  0x8e   : > { %v540_v57 = vadd.f32 %v538_v52, %v531_v36  ;;  %v582_v52 = vstv %s2676_s11  ;;  %v574_v35 = vmul.f32 %v2699_v45, %v573_v50  ;;  %v575_v36 = vmul.f32 %v2702_v55, %v573_v50  ;;  %s2088_s11 = sshll.u32 %s2179_s13, 4  ;;  %s2089_s11 = int_to_ptr.vmem [resolvable:$false] %s2088_s11 }
  0x8f   : > { %v541_v34 = vadd.f32 %v539_v49, %v532_v9  ;;  %s2090_s12 = scalar_lea.vmem %s2089_s11, 16384  ;;  %p2091_p0 = scmp.lt.s32.totalorder %s3091_s14, %s2089_s11 }
  0x90   : > { %v549_v17 = vadd.f32 %v547_v8, %v540_v57  ;;  %v583_v8 = vmul.f32 %v2708_v44, %v582_v52  ;;  %p2092_p1 = scmp.lt.s32.totalorder %s2090_s12, %s2084_s8 }
  0x91   : > { %v550_v16 = vadd.f32 %v548_v28, %v541_v34  ;;  %v584_v34 = vmul.f32 %v2711_v42, %v582_v52 }
  0x92   : > { %v558_v9 = vadd.f32 %v556_v23, %v549_v17  ;;  %p2093_p9 = por %p2092_p1, %p2091_p0 }
  0x93   : > { %v559_v49 = vadd.f32 %v557_v51, %v550_v16 }
  0x94   : > { %v567_v22 = vadd.f32 %v565_v63, %v558_v9  ;;  %p2094_p8 = pnand %p2093_p9, %p2087_p6 }
  0x95   : > { %v568_v31 = vadd.f32 %v566_v62, %v559_v49 }
  0x96   : > { %v576_v28 = vadd.f32 %v574_v35, %v567_v22 }
  0x97   : > { %v577_v57 = vadd.f32 %v575_v36, %v568_v31 }
  0x98   : > { %v585_v56 = vadd.f32 %v583_v8, %v576_v28 }
  0x99   : > { %v586_v43 = vadd.f32 %v584_v34, %v577_v57 }
  0x9b   : > { %v587_v48 = vmax.f32 %v585_v56, %v586_v43 }
  0x9d   : > { %588 = vmax.xlane.f32.xlu0 %v587_v48 }
 0x12a   : > { %v589_v37 = vpop.xlane.xlu0 %588 }
 0x12b   : > { %v590_v41 = vsub.f32 %v585_v56, %v589_v37  ;;  %v591_v23 = vsub.f32 %v586_v43, %v589_v37 }
 0x12d   : > { %v592_v51 = vmul.f32 1.442695, %v590_v41  ;;  %v594_v17 = vmul.f32 1.442695, %v591_v23 }
 0x12f   : > { %1965 = vpow2.f32 %v592_v51 }
 0x130   : > { %1967 = vpow2.f32 %v594_v17 }
 0x139   : > { %v1966_v50 = vpop.eup %1965 }
 0x13a   : > { %v1968_v63 = vpop.eup %1967 }
 0x13b   : > { %v596_v62 = vadd.f32 %v1968_v63, %v1966_v50 }
 0x13d   : > { %597 = vadd.xlane.f32.xlu0 %v596_v62 }
 0x1ca   : > { %v598_v16 = vpop.xlane.xlu0 %597 }
 0x1cb   : > { %1969 = vrcp.f32 %v598_v16 }
 0x1d5   : > { %v1970_v52 = vpop.eup %1969 }
 0x1d6   : > { %v2718_v22 = vmul.f32 %v1970_v52, %v1966_v50  ;;  %v2720_v31 = vmul.f32 %v1970_v52, %v1968_v63 }
 0x1d8   : > { %v670_v48 = vmul.f32 %v2397_v5, %v2718_v22  ;;  %v671_v41 = vmul.f32 %v2400_v6, %v2720_v31  ;;  %v666_v37 = vmul.f32 %v2718_v22, %v2381_v0  ;;  %v667_v43 = vmul.f32 %v2720_v31, %v2384_v1 }
 0x1d9   : > { %v682_v9 = vmul.f32 %v2461_v46, %v2718_v22  ;;  %v683_v49 = vmul.f32 %v2464_v47, %v2720_v31  ;;  %v668_v5 = vmul.f32 %v2389_v2, %v2718_v22  ;;  %v669_v6 = vmul.f32 %v2392_v3, %v2720_v31 }
 0x1da   : > { %v736_v35 = vadd.f32 %v671_v41, %v670_v48  ;;  %v730_v36 = vadd.f32 %v667_v43, %v666_v37  ;;  %v674_v0 = vmul.f32 %v2418_v19, %v2718_v22  ;;  %v675_v1 = vmul.f32 %v2421_v20, %v2720_v31 }
 0x1db   : > { %v754_v46 = vadd.f32 %v683_v49, %v682_v9  ;;  %v733_v8 = vadd.f32 %v669_v6, %v668_v5  ;;  %v672_v47 = vmul.f32 %v2403_v7, %v2718_v22  ;;  %v673_v34 = vmul.f32 %v2408_v11, %v2720_v31  ;;  %v3217_v49 = vld [vmem:[#allocation15_spill] sm:$0xff] }
 0x1dc   : > { %737 = vadd.xlane.f32.xlu0 %v736_v35  ;;  %731 = vadd.xlane.f32.xlu1 %v730_v36  ;;  %v676_v2 = vmul.f32 %v2428_v25, %v2718_v22  ;;  %v677_v3 = vmul.f32 %v2431_v26, %v2720_v31  ;;  %v742_v19 = vadd.f32 %v675_v1, %v674_v0  ;;  %v3219_v36 = vld [vmem:[#allocation27_spill] sm:$0xff]  ;;  %v3220_v0 = vld [vmem:[#allocation24_spill] sm:$0xff] }
 0x1dd   : > { %v739_v28 = vadd.f32 %v673_v34, %v672_v47  ;;  %v684_v20 = vmul.f32 %v2472_v53, %v2718_v22  ;;  %v685_v57 = vmul.f32 %v2475_v54, %v2720_v31  ;;  %v698_v11 = vmul.f32 %v2549_v58, %v2718_v22  ;;  %v3222_v34 = vld [vmem:[#allocation18_spill] sm:$0xff] }
 0x1de   : > { %v745_v7 = vadd.f32 %v677_v3, %v676_v2  ;;  %v699_v25 = vmul.f32 %v2552_v59, %v2720_v31  ;;  %v686_v26 = vmul.f32 %v2483_v60, %v2718_v22  ;;  %v687_v23 = vmul.f32 %v2486_v61, %v2720_v31 }
 0x1df   : > { %v757_v56 = vadd.f32 %v685_v57, %v684_v20  ;;  %v678_v53 = vmul.f32 %v2439_v32, %v2718_v22  ;;  %v679_v54 = vmul.f32 %v2442_v33, %v2720_v31  ;;  %v688_v17 = vmul.f32 %v2494_v10, %v2718_v22  ;;  %v3224_v20 = vld [vmem:[#allocation16_spill] sm:$0xff] }
 0x1e0   : > { %755 = vadd.xlane.f32.xlu0 %v754_v46  ;;  %734 = vadd.xlane.f32.xlu1 %v733_v8  ;;  %v778_v51 = vadd.f32 %v699_v25, %v698_v11  ;;  %v760_v58 = vadd.f32 %v687_v23, %v686_v26  ;;  %v689_v59 = vmul.f32 %v2497_v12, %v2720_v31  ;;  %v3221_v46 = vld [vmem:[#allocation25_spill] sm:$0xff] }
 0x1e1   : > { %v702_v60 = vmul.f32 %v2571_v24, %v2718_v22  ;;  %v703_v61 = vmul.f32 %v2574_v27, %v2720_v31  ;;  %v748_v32 = vadd.f32 %v679_v54, %v678_v53  ;;  %v700_v33 = vmul.f32 %v2560_v13, %v2718_v22  ;;  %v3227_v26 = vld [vmem:[#allocation21_spill] sm:$0xff] }
 0x1e2   : > { %v763_v50 = vadd.f32 %v689_v59, %v688_v17  ;;  %v701_v63 = vmul.f32 %v2563_v14, %v2720_v31  ;;  %v728_v10 = vmul.f32 %v2708_v44, %v2718_v22  ;;  %v729_v12 = vmul.f32 %v2711_v42, %v2720_v31  ;;  %v3229_v17 = vld [vmem:[#allocation13_spill] sm:$0xff] }
 0x1e3   : > { %v784_v24 = vadd.f32 %v703_v61, %v702_v60  ;;  %v692_v27 = vmul.f32 %v2516_v29, %v2718_v22  ;;  %v693_v62 = vmul.f32 %v2519_v30, %v2720_v31  ;;  %v690_v13 = vmul.f32 %v2505_v18, %v2718_v22  ;;  %v3230_v60 = vld [vmem:[#allocation22_spill] sm:$0xff] }
 0x1e4   : > { %743 = vadd.xlane.f32.xlu0 %v742_v19  ;;  %740 = vadd.xlane.f32.xlu1 %v739_v28  ;;  %v781_v16 = vadd.f32 %v701_v63, %v700_v33  ;;  %v691_v14 = vmul.f32 %v2508_v21, %v2720_v31  ;;  %v2790_v44 = vadd.f32 %v729_v12, %v728_v10  ;;  %v3223_v19 = vld [vmem:[#allocation19_spill] sm:$0xff]  ;;  %v3232_v10 = vld [vmem:[#allocation28_spill] sm:$0xff] }
 0x1e5   : > { %v714_v42 = vmul.f32 %v2637_v4, %v2718_v22  ;;  %v715_v29 = vmul.f32 %v2640_v15, %v2720_v31  ;;  %v769_v52 = vadd.f32 %v693_v62, %v692_v27  ;;  %v680_v30 = vmul.f32 %v2450_v39, %v2718_v22  ;;  %v3215_v4 = vld [vmem:[#allocation11_spill] sm:$0xff]  ;;  %v3216_v15 = vld [vmem:[#allocation14_spill] sm:$0xff] }
 0x1e6   : > { %v766_v48 = vadd.f32 %v691_v14, %v690_v13  ;;  %v681_v18 = vmul.f32 %v2453_v40, %v2720_v31  ;;  %v694_v41 = vmul.f32 %v2527_v38, %v2718_v22  ;;  %v695_v43 = vmul.f32 %v3215_v4, %v2720_v31  ;;  %v3218_v39 = vld [vmem:[#allocation26_spill] sm:$0xff] }
 0x1e7   : > { %v802_v21 = vadd.f32 %v715_v29, %v714_v42  ;;  %v704_v9 = vmul.f32 %v3216_v15, %v2718_v22  ;;  %v705_v35 = vmul.f32 %v3217_v49, %v2720_v31  ;;  %v718_v40 = vmul.f32 %v3218_v39, %v2718_v22  ;;  %v3234_v42 = vld [vmem:[#allocation30_spill] sm:$0xff] }
 0x1e8   : > { %746 = vadd.xlane.f32.xlu0 %v745_v7  ;;  %758 = vadd.xlane.f32.xlu1 %v757_v56  ;;  %v751_v37 = vadd.f32 %v681_v18, %v680_v30  ;;  %v719_v5 = vmul.f32 %v3219_v36, %v2720_v31  ;;  %v772_v6 = vadd.f32 %v695_v43, %v694_v41  ;;  %v3225_v7 = vld [vmem:[#allocation17_spill] sm:$0xff]  ;;  %v3226_v56 = vld [vmem:[#allocation20_spill] sm:$0xff]  ;;  %v2176_v15 = vmov 0.0|0.0  }
 0x1e9   : > { %v787_v38 = vadd.f32 %v705_v35, %v704_v9  ;;  %v716_v1 = vmul.f32 %v3220_v0, %v2718_v22  ;;  %v717_v8 = vmul.f32 %v3221_v46, %v2720_v31  ;;  %v708_v2 = vmul.f32 %v3222_v34, %v2718_v22  ;;  %v1060_v43 = vld [vmem:[%s3146_s2 + $0x8] sm:$0xff]  ;;  %1876 = vmatprep.subr.bf16.mxu0 %v2176_v15  ;;  %v1062_v9 = vld [vmem:[%s3146_s2 + $0x18] sm:$0xff] }
 0x1ea   : > { %v808_v47 = vadd.f32 %v719_v5, %v718_v40  ;;  %v709_v28 = vmul.f32 %v3223_v19, %v2720_v31  ;;  %v706_v57 = vmul.f32 %v3224_v20, %v2718_v22  ;;  %v707_v11 = vmul.f32 %v3225_v7, %v2720_v31  ;;  %1882 = vmatprep.subr.bf16.mxu1 %v2176_v15 }
 0x1eb   : > { %v805_v3 = vadd.f32 %v717_v8, %v716_v1  ;;  %v710_v25 = vmul.f32 %v3226_v56, %v2718_v22  ;;  %v711_v23 = vmul.f32 %v3227_v26, %v2720_v31  ;;  %v697_v59 = vmul.f32 %v3229_v17, %v2720_v31 }
 0x1ec   : > { %779 = vadd.xlane.f32.xlu0 %v778_v51  ;;  %761 = vadd.xlane.f32.xlu1 %v760_v58  ;;  %v793_v53 = vadd.f32 %v709_v28, %v708_v2  ;;  %v790_v54 = vadd.f32 %v707_v11, %v706_v57  ;;  %v3228_v51 = vld [vmem:[#allocation12_spill] sm:$0xff]  ;;  %v712_v61 = vmul.f32 %v3230_v60, %v2718_v22 }
 0x1ed   : > { %v696_v58 = vmul.f32 %v3228_v51, %v2718_v22  ;;  %v796_v33 = vadd.f32 %v711_v23, %v710_v25  ;;  %v720_v12 = vmul.f32 %v3232_v10, %v2718_v22  ;;  %v727_v14 = vmul.f32 %v2702_v55, %v2720_v31  ;;  %v1059_v55 = vld [vmem:[%s3146_s2] sm:$0xff] }
 0x1ee   : > { %v722_v29 = vmul.f32 %v3234_v42, %v2718_v22 }
 0x1ef   : > { %v775_v63 = vadd.f32 %v697_v59, %v696_v58 }
 0x1f0   : > { %749 = vadd.xlane.f32.xlu0 %v748_v32  ;;  %764 = vadd.xlane.f32.xlu1 %v763_v50  ;;  %v3231_v32 = vld [vmem:[#allocation23_spill] sm:$0xff] }
 0x1f1   : > { %v713_v50 = vmul.f32 %v3231_v32, %v2720_v31 }
 0x1f3   : > { %v799_v62 = vadd.f32 %v713_v50, %v712_v61 }
 0x1f4   : > { %785 = vadd.xlane.f32.xlu0 %v784_v24  ;;  %782 = vadd.xlane.f32.xlu1 %v781_v16  ;;  %v3233_v24 = vld [vmem:[#allocation29_spill] sm:$0xff]  ;;  %v726_v16 = vmul.f32 %v2699_v45, %v2718_v22 }
 0x1f5   : > { %v721_v27 = vmul.f32 %v3233_v24, %v2720_v31 }
 0x1f6   : > { %v820_v30 = vadd.f32 %v727_v14, %v726_v16 }
 0x1f7   : > { %v811_v13 = vadd.f32 %v721_v27, %v720_v12 }
 0x1f8   : > { %770 = vadd.xlane.f32.xlu0 %v769_v52  ;;  %767 = vadd.xlane.f32.xlu1 %v766_v48  ;;  %v3235_v52 = vld [vmem:[#allocation31_spill] sm:$0xff] }
 0x1f9   : > { %v723_v48 = vmul.f32 %v3235_v52, %v2720_v31 }
 0x1fb   : > { %v814_v18 = vadd.f32 %v723_v48, %v722_v29 }
 0x1fc   : > { %803 = vadd.xlane.f32.xlu0 %v802_v21  ;;  %752 = vadd.xlane.f32.xlu1 %v751_v37  ;;  %v3236_v21 = vld [vmem:[#allocation32_spill] sm:$0xff]  ;;  %v3237_v37 = vld [vmem:[#allocation33_spill] sm:$0xff] }
 0x1fd   : > { %v724_v41 = vmul.f32 %v3236_v21, %v2718_v22  ;;  %v725_v45 = vmul.f32 %v3237_v37, %v2720_v31  ;;  %v1061_v22 = vld [vmem:[%s3146_s2 + $0x10] sm:$0xff]  ;;  %v1877_v31 = vpack.c.bf16 %v1060_v43, %v1059_v55 }
 0x1fe   : > { %v1880_v49 = vpack.c.bf16 %v1062_v9, %v1061_v22 }
 0x1ff   : > { %v817_v4 = vadd.f32 %v725_v45, %v724_v41  ;;  %1878 = vmatpush3.bf16.msra.mxu0 %v1877_v31 }
 0x200   : > { %773 = vadd.xlane.f32.xlu0 %v772_v6  ;;  %788 = vadd.xlane.f32.xlu1 %v787_v38  ;;  %v858_v38 = vlaneseq }
 0x201   : > { %1879 = vmatprep.subr.bf16.mxu0 %v2176_v15 }
 0x202   : > { %v859_v46 = vand.u32 127, %v858_v38  ;;  %v2865_v8 = vshrl.u32 %v858_v38, 7 }
 0x203   : > { %1881 = vmatpush3.bf16.msra.mxu0 %v1880_v49 }
 0x204   : > { %809 = vadd.xlane.f32.xlu0 %v808_v47  ;;  %806 = vadd.xlane.f32.xlu1 %v805_v3  ;;  %v2868_v2 = vsub.s32 %v859_v46, %v2865_v8 }
 0x208   : > { %794 = vadd.xlane.f32.xlu0 %v793_v53  ;;  %791 = vadd.xlane.f32.xlu1 %v790_v54 }
 0x20c   : > { %797 = vadd.xlane.f32.xlu0 %v796_v33  ;;  %776 = vadd.xlane.f32.xlu1 %v775_v63 }
 0x210   : > { %800 = vadd.xlane.f32.xlu0 %v799_v62  ;;  %812 = vadd.xlane.f32.xlu1 %v811_v13 }
 0x214   : > { %821 = vadd.xlane.f32.xlu0 %v820_v30  ;;  %815 = vadd.xlane.f32.xlu1 %v814_v18 }
 0x218   : > { %818 = vadd.xlane.f32.xlu1 %v817_v4 }
 0x21c   : > { %824 = vadd.xlane.f32.xlu1 %v2790_v44  ;;  %v2178_v44 = vmov 0.0  }
 0x21d   : > { %1866 = vmatprep.mubr.msk.f32.mxu0 %vm2177_vm0, %v2178_v44  ;;  %1873 = vmatprep.mubr.msk.f32.mxu1 %vm2177_vm0, %v2178_v44 }
 0x269   : > { %v738_v35 = vpop.xlane.xlu0 %737  ;;  %v732_v39 = vpop.xlane.xlu1 %731 }
 0x26a   : > { %v863_v20 = vrot.slane %v732_v39, %v2868_v2  ;;  %v871_v25 = vrot.slane %v738_v35, %v2868_v2 }
 0x26d   : > { %v756_v40 = vpop.xlane.xlu0 %755  ;;  %v735_v36 = vpop.xlane.xlu1 %734 }
 0x26e   : > { %v867_v28 = vrot.slane %v735_v36, %v2868_v2  ;;  %v895_v13 = vrot.slane %v756_v40, %v2868_v2 }
 0x270   : > { %v989_v11 = vsel %vm988_vm1, %v867_v28, %v863_v20 }
 0x271   : > { %v744_v5 = vpop.xlane.xlu0 %743  ;;  %v741_v6 = vpop.xlane.xlu1 %740  ;;  %v991_v23 = vsel %vm990_vm2, %v871_v25, %v989_v11 }
 0x272   : > { %v875_v56 = vrot.slane %v741_v6, %v2868_v2  ;;  %v879_v26 = vrot.slane %v744_v5, %v2868_v2 }
 0x274   : > { %v993_v51 = vsel %vm992_vm3, %v875_v56, %v991_v23 }
 0x275   : > { %v747_v0 = vpop.xlane.xlu0 %746  ;;  %v759_v1 = vpop.xlane.xlu1 %758  ;;  %v995_v61 = vsel %vm994_vm4, %v879_v26, %v993_v51 }
 0x276   : > { %v883_v58 = vrot.slane %v747_v0, %v2868_v2  ;;  %v899_v24 = vrot.slane %v759_v1, %v2868_v2 }
 0x278   : > { %v997_v50 = vsel %vm996_vm5, %v883_v58, %v995_v61  ;;  %v1002_v52 = vsel %vm988_vm1, %v899_v24, %v895_v13  ;;  %v1841_v13 = vld [vmem:[%s3149_s5] ss:$0 sm:$0xff] }
 0x279   : > { %v780_v47 = vpop.xlane.xlu0 %779  ;;  %v762_v34 = vpop.xlane.xlu1 %761 }
 0x27a   : > { %v903_v27 = vrot.slane %v762_v34, %v2868_v2  ;;  %v927_v48 = vrot.slane %v780_v47, %v2868_v2 }
 0x27c   : > { %v1003_v30 = vsel %vm990_vm2, %v903_v27, %v1002_v52 }
 0x27d   : > { %v750_v3 = vpop.xlane.xlu0 %749  ;;  %v765_v19 = vpop.xlane.xlu1 %764 }
 0x27e   : > { %v887_v17 = vrot.slane %v750_v3, %v2868_v2  ;;  %v907_v14 = vrot.slane %v765_v19, %v2868_v2 }
 0x280   : > { %v999_v33 = vsel %vm998_vm6, %v887_v17, %v997_v50  ;;  %v1004_v37 = vsel %vm992_vm3, %v907_v14, %v1003_v30 }
 0x281   : > { %v786_v57 = vpop.xlane.xlu0 %785  ;;  %v783_v7 = vpop.xlane.xlu1 %782 }
 0x282   : > { %v931_v42 = vrot.slane %v783_v7, %v2868_v2  ;;  %v935_v18 = vrot.slane %v786_v57, %v2868_v2 }
 0x284   : > { %v1009_v45 = vsel %vm988_vm1, %v931_v42, %v927_v48 }
 0x285   : > { %v771_v53 = vpop.xlane.xlu0 %770  ;;  %v768_v54 = vpop.xlane.xlu1 %767  ;;  %v1010_v31 = vsel %vm990_vm2, %v935_v18, %v1009_v45 }
 0x286   : > { %v911_v29 = vrot.slane %v768_v54, %v2868_v2  ;;  %v915_v4 = vrot.slane %v771_v53, %v2868_v2 }
 0x288   : > { %v1005_v43 = vsel %vm994_vm4, %v911_v29, %v1004_v37  ;;  %v1269_v37 = vsub.s32 0, %v2865_v8 }
 0x289   : > { %v804_v59 = vpop.xlane.xlu0 %803  ;;  %v753_v60 = vpop.xlane.xlu1 %752  ;;  %v1006_v40 = vsel %vm996_vm5, %v915_v4, %v1005_v43  ;;  %v1297_v43 = vsub.s32 4, %v2865_v8 }
 0x28a   : > { %v891_v32 = vrot.slane %v753_v60, %v2868_v2  ;;  %v959_v19 = vrot.slane %v804_v59, %v2868_v2 }
 0x28c   : > { %v1001_v63 = vsel %vm1000_vm7, %v891_v32, %v999_v33  ;;  %v1147_v33 = vld [vmem:[%s3148_s4] sm:$0xff] }
 0x28d   : > { %v774_v10 = vpop.xlane.xlu0 %773  ;;  %1027 = vxpose.xlu0.b32.start [1/4] (short) (narrow) %v1001_v63, 8  ;;  %v789_v12 = vpop.xlane.xlu1 %788  ;;  %v1148_v63 = vld [vmem:[%s3148_s4 + $0x8] sm:$0xff] }
 0x28e   : > { %v939_v55 = vrot.slane %v789_v12, %v2868_v2  ;;  %v919_v22 = vrot.slane %v774_v10, %v2868_v2  ;;  %v1883_v10 = vpack.c.bf16 %v1148_v63, %v1147_v33  ;;  %v1975_v33 = vld [vmem:[%s2372_s0 + $0x10] sm:$0xff] }
 0x290   : > { %v1011_v49 = vsel %vm992_vm3, %v939_v55, %v1010_v31  ;;  %v1007_v6 = vsel %vm998_vm6, %v919_v22, %v1006_v40  ;;  %1884 = vmatpush3.bf16.msra.mxu1 %v1883_v10  ;;  %v1283_v22 = vsub.s32 2, %v2865_v8  ;;  %v1304_v40 = vsub.s32 5, %v2865_v8  ;;  %v1976_v10 = vld [vmem:[%s2372_s0 + $0x18] sm:$0xff] }
 0x291   : > { %v810_v62 = vpop.xlane.xlu0 %809  ;;  %v807_v16 = vpop.xlane.xlu1 %806 }
 0x292   : > { %v963_v46 = vrot.slane %v807_v16, %v2868_v2  ;;  %v967_v20 = vrot.slane %v810_v62, %v2868_v2 }
 0x294   : > { %v1016_v7 = vsel %vm988_vm1, %v963_v46, %v959_v19 }
 0x295   : > { %v795_v21 = vpop.xlane.xlu0 %794  ;;  %v792_v41 = vpop.xlane.xlu1 %791  ;;  %v1017_v25 = vsel %vm990_vm2, %v967_v20, %v1016_v7 }
 0x296   : > { %v943_v15 = vrot.slane %v792_v41, %v2868_v2  ;;  %v947_v35 = vrot.slane %v795_v21, %v2868_v2  ;;  %v2943_v41 = vsub.s32 1, %v2865_v8 }
 0x298   : > { %v1012_v36 = vsel %vm994_vm4, %v943_v15, %v1011_v49 }
 0x299   : > { %v798_v9 = vpop.xlane.xlu0 %797  ;;  %v777_v44 = vpop.xlane.xlu1 %776  ;;  %v1013_v34 = vsel %vm996_vm5, %v947_v35, %v1012_v36 }
 0x29a   : > { %v923_v39 = vrot.slane %v777_v44, %v2868_v2  ;;  %v951_v5 = vrot.slane %v798_v9, %v2868_v2  ;;  %v1311_v9 = vsub.s32 6, %v2865_v8  ;;  %v1290_v44 = vsub.s32 3, %v2865_v8 }
 0x29c   : > { %v1008_v38 = vsel %vm1000_vm7, %v923_v39, %v1007_v6  ;;  %v1014_v3 = vsel %vm998_vm6, %v951_v5, %v1013_v34  ;;  %v1318_v6 = vsub.s32 7, %v2865_v8 }
 0x29d   : > { %v801_v0 = vpop.xlane.xlu0 %800  ;;  %1028 = vxpose.xlu0.b32.cont [2/4] (short) (narrow) %v1008_v38, 8  ;;  %v813_v1 = vpop.xlane.xlu1 %812 }
 0x29e   : > { %v955_v47 = vrot.slane %v801_v0, %v2868_v2  ;;  %v971_v11 = vrot.slane %v813_v1, %v2868_v2 }
 0x2a0   : > { %v1015_v28 = vsel %vm1000_vm7, %v955_v47, %v1014_v3  ;;  %v1018_v23 = vsel %vm992_vm3, %v971_v11, %v1017_v25 }
 0x2a1   : > { %1029 = vxpose.xlu0.b32.cont [3/4] (short) (narrow) %v1015_v28, 8  ;;  %v816_v57 = vpop.xlane.xlu1 %815  ;;  %v822_v53 = vpop.xlane.xlu0 %821 }
 0x2a2   : > { %v975_v56 = vrot.slane %v816_v57, %v2868_v2  ;;  %v983_v17 = vrot.slane %v822_v53, %v2868_v2 }
 0x2a4   : > { %v1019_v51 = vsel %vm994_vm4, %v975_v56, %v1018_v23 }
 0x2a5   : > { %v819_v26 = vpop.xlane.xlu1 %818 }
 0x2a6   : > { %v979_v54 = vrot.slane %v819_v26, %v2868_v2 }
 0x2a8   : > { %v1020_v58 = vsel %vm996_vm5, %v979_v54, %v1019_v51 }
 0x2a9   : > { %v825_v59 = vpop.xlane.xlu1 %824  ;;  %v1021_v61 = vsel %vm998_vm6, %v983_v17, %v1020_v58 }
 0x2aa   : > { %v987_v60 = vrot.slane %v825_v59, %v2868_v2  ;;  %v1839_v2 = vld [vmem:[%s3147_s3] ss:$0 sm:$0xff] }
 0x2ac   : > { %v1022_v32 = vsel %vm1000_vm7, %v987_v60, %v1021_v61 }
 0x2ad   : > { %1030 = vxpose.xlu0.b32.end [4/4] (short) (narrow) %v1022_v32, 8 }
 0x321   : > { %v1043_v50 = vpop.trf.xlu0 }
 0x322   : > { %1867 = vmatmul.mubr.msk.f32.vlgmr.msra.gmra.mrb[0].mxu0 %vm1070_vm8, %v1043_v50 }
 0x3f5   : > { %v1140_v12 = vpop.f32.mrb[0].mxu0 }
 0x3f6   : > { %v1141_v24 = vadd.f32 %v1839_v2, %v1140_v12  ;;  %v1868_v27 = vpop.f32.mrb[1].mxu0  ;;  %v1977_v12 = vld [vmem:[%s2372_s0] sm:$0xff] }
 0x3f7   : > { %v1978_v27 = vld [vmem:[%s2372_s0 + $0x8] sm:$0xff] }
 0x3f8   : > { %vm1144_vm9 = vcmp.ge.f32.partialorder %v1141_v24, 0.0  ;;  %v1145_v62 = vmul.f32 0.1, %v1141_v24 }
 0x3fa   : > { %v1146_v16 = vsel %vm1144_vm9, %v1141_v24, %v1145_v62 }
 0x3fb   : > { %1874 = vmatmul.mubr.msk.f32.vlgmr.msra.gmra.mrb[0].mxu1 %vm1156_vm10, %v1146_v16 }
 0x4ce   : > { %v1226_v14 = vpop.f32.mrb[0].mxu1 }
 0x4cf   : > { %v1227_v42 = vadd.f32 %v1841_v13, %v1226_v14  ;;  %v1875_v29 = vpop.f32.mrb[1].mxu1  ;;  %v1979_v14 = vld [vmem:[%s2372_s0 + $0x40] sm:$0xff] }
 0x4d0   : > { %v1980_v29 = vld [vmem:[%s2372_s0 + $0x48] sm:$0xff] }
 0x4d1   : > { %v1230_v52 = vsub.f32 0.0, %v1227_v42 }
 0x4d3   : > { %v1231_v48 = vmul.f32 1.442695, %v1230_v52 }
 0x4d5   : > { %1971 = vpow2.f32 %v1231_v48  ;;  %v1981_v48 = vld [vmem:[%s2372_s0 + $0x20] sm:$0xff] }
 0x4df   : > { %v1972_v30 = vpop.eup %1971 }
 0x4e0   : > { %v1233_v18 = vadd.f32 1.0, %v1972_v30 }
 0x4e2   : > { %1973 = vrcp.f32 %v1233_v18  ;;  %v1982_v18 = vld [vmem:[%s2372_s0 + $0x28] sm:$0xff] }
 0x4ec   : > { %v1974_v21 = vpop.eup %1973 }
 0x4ed   : > { %1235 = vxpose.xlu1.b32.start.end [1/1] (short) (narrow) %v1974_v21, 32 }
 0x56d   : > { %v1251_v45 = vpop.trf.xlu1 }
 0x56e   : > { %v1277_v4 = vrot.slane %v1251_v45, %v2943_v41  ;;  %v1270_v55 = vrot.slane %v1251_v45, %v1269_v37  ;;  %v1298_v15 = vrot.slane %v1251_v45, %v1297_v43  ;;  %v1284_v31 = vrot.slane %v1251_v45, %v1283_v22 }
 0x56f   : > { %v1312_v35 = vrot.slane %v1251_v45, %v1311_v9  ;;  %v1291_v39 = vrot.slane %v1251_v45, %v1290_v44  ;;  %v1305_v5 = vrot.slane %v1251_v45, %v1304_v40  ;;  %v1319_v0 = vrot.slane %v1251_v45, %v1318_v6  ;;  %v1983_v45 = vld [vmem:[%s2372_s0 + $0x60] sm:$0xff] }
 0x570   : > { %1279 = vbcast.lane.b32.xlu0 %v1277_v4, 256  ;;  %1272 = vbcast.lane.b32.xlu1 %v1270_v55, 256  ;;  %v1984_v55 = vld [vmem:[%s2372_s0 + $0x68] sm:$0xff] }
 0x571   : > { %v1252_v49 = vpop.trf.xlu1 }
 0x572   : > { %v1326_v36 = vrot.slane %v1252_v49, %v1269_v37  ;;  %v1340_v38 = vrot.slane %v1252_v49, %v1283_v22  ;;  %v1333_v1 = vrot.slane %v1252_v49, %v2943_v41  ;;  %v1354_v46 = vrot.slane %v1252_v49, %v1297_v43 }
 0x573   : > { %v1347_v34 = vrot.slane %v1252_v49, %v1290_v44  ;;  %v1368_v3 = vrot.slane %v1252_v49, %v1311_v9  ;;  %v1361_v28 = vrot.slane %v1252_v49, %v1304_v40  ;;  %v1375_v20 = vrot.slane %v1252_v49, %v1318_v6 }
 0x574   : > { %1300 = vbcast.lane.b32.xlu0 %v1298_v15, 256  ;;  %1286 = vbcast.lane.b32.xlu1 %v1284_v31, 256  ;;  %v1986_v31 = vld [vmem:[%s2372_s0 + $0x38] sm:$0xff] }
 0x575   : > { %v1253_v47 = vpop.trf.xlu1 }
 0x576   : > { %v1382_v19 = vrot.slane %v1253_v47, %v1269_v37  ;;  %v1396_v8 = vrot.slane %v1253_v47, %v1283_v22  ;;  %v1389_v57 = vrot.slane %v1253_v47, %v2943_v41  ;;  %v1410_v7 = vrot.slane %v1253_v47, %v1297_v43 }
 0x577   : > { %v1403_v56 = vrot.slane %v1253_v47, %v1290_v44  ;;  %v1424_v25 = vrot.slane %v1253_v47, %v1311_v9  ;;  %v1417_v23 = vrot.slane %v1253_v47, %v1304_v40  ;;  %v1431_v54 = vrot.slane %v1253_v47, %v1318_v6  ;;  %v1991_v47 = vld [vmem:[%s2372_s0 + $0xa0] sm:$0xff] }
 0x578   : > { %1314 = vbcast.lane.b32.xlu0 %v1312_v35, 256  ;;  %1293 = vbcast.lane.b32.xlu1 %v1291_v39, 256  ;;  %v1987_v35 = vld [vmem:[%s2372_s0 + $0x80] sm:$0xff] }
 0x579   : > { %v1254_v11 = vpop.trf.xlu1 }
 0x57a   : > { %v1438_v26 = vrot.slane %v1254_v11, %v1269_v37  ;;  %v1452_v53 = vrot.slane %v1254_v11, %v1283_v22  ;;  %v1445_v51 = vrot.slane %v1254_v11, %v2943_v41  ;;  %v1466_v58 = vrot.slane %v1254_v11, %v1297_v43  ;;  %v1985_v22 = vld [vmem:[%s2372_s0 + $0x30] sm:$0xff] }
 0x57b   : > { %v1459_v17 = vrot.slane %v1254_v11, %v1290_v44  ;;  %v1480_v59 = vrot.slane %v1254_v11, %v1311_v9  ;;  %v1473_v60 = vrot.slane %v1254_v11, %v1304_v40  ;;  %v1487_v61 = vrot.slane %v1254_v11, %v1318_v6  ;;  %v1988_v40 = vld [vmem:[%s2372_s0 + $0x88] sm:$0xff] }
 0x57c   : > { %1307 = vbcast.lane.b32.xlu1 %v1305_v5, 256  ;;  %1328 = vbcast.lane.b32.xlu0 %v1326_v36, 256  ;;  %v1989_v5 = vld [vmem:[%s2372_s0 + $0x50] sm:$0xff] }
 0x580   : > { %1321 = vbcast.lane.b32.xlu1 %v1319_v0, 256  ;;  %1342 = vbcast.lane.b32.xlu0 %v1340_v38, 256  ;;  %v1990_v38 = vld [vmem:[%s2372_s0 + $0x58] sm:$0xff] }
 0x584   : > { %1335 = vbcast.lane.b32.xlu1 %v1333_v1, 256  ;;  %1356 = vbcast.lane.b32.xlu0 %v1354_v46, 256 }
 0x588   : > { %1349 = vbcast.lane.b32.xlu1 %v1347_v34, 256  ;;  %1370 = vbcast.lane.b32.xlu0 %v1368_v3, 256  ;;  %v1992_v3 = vld [vmem:[%s2372_s0 + $0xa8] sm:$0xff] }
 0x58c   : > { %1363 = vbcast.lane.b32.xlu1 %v1361_v28, 256  ;;  %1384 = vbcast.lane.b32.xlu0 %v1382_v19, 256  ;;  %v1993_v28 = vld [vmem:[%s2372_s0 + $0x70] sm:$0xff] }
 0x590   : > { %1377 = vbcast.lane.b32.xlu1 %v1375_v20, 256  ;;  %1398 = vbcast.lane.b32.xlu0 %v1396_v8, 256  ;;  %v1994_v20 = vld [vmem:[%s2372_s0 + $0x78] sm:$0xff] }
 0x594   : > { %1391 = vbcast.lane.b32.xlu1 %v1389_v57, 256  ;;  %1412 = vbcast.lane.b32.xlu0 %v1410_v7, 256 }
 0x598   : > { %1405 = vbcast.lane.b32.xlu1 %v1403_v56, 256  ;;  %1426 = vbcast.lane.b32.xlu0 %v1424_v25, 256  ;;  %v1995_v56 = vld [vmem:[%s2372_s0 + $0xc0] sm:$0xff] }
 0x59c   : > { %1419 = vbcast.lane.b32.xlu1 %v1417_v23, 256  ;;  %1440 = vbcast.lane.b32.xlu0 %v1438_v26, 256  ;;  %v1996_v26 = vld [vmem:[%s2372_s0 + $0xc8] sm:$0xff] }
 0x5a0   : > { %1433 = vbcast.lane.b32.xlu1 %v1431_v54, 256  ;;  %1454 = vbcast.lane.b32.xlu0 %v1452_v53, 256  ;;  %v1997_v53 = vld [vmem:[%s2372_s0 + $0x90] sm:$0xff] }
 0x5a4   : > { %1447 = vbcast.lane.b32.xlu1 %v1445_v51, 256  ;;  %1468 = vbcast.lane.b32.xlu0 %v1466_v58, 256  ;;  %v1998_v51 = vld [vmem:[%s2372_s0 + $0x98] sm:$0xff] }
 0x5a8   : > { %1461 = vbcast.lane.b32.xlu1 %v1459_v17, 256  ;;  %1482 = vbcast.lane.b32.xlu0 %v1480_v59, 256 }
 0x5ac   : > { %1475 = vbcast.lane.b32.xlu1 %v1473_v60, 256  ;;  %v1999_v60 = vld [vmem:[%s2372_s0 + $0xe0] sm:$0xff] }
 0x5b0   : > { %1489 = vbcast.lane.b32.xlu1 %v1487_v61, 256 }
 0x5e2   : > { %v1280_v32 = vpop.permute.xlu0 %1279  ;;  %v1273_v50 = vpop.permute.xlu1 %1272 }
 0x5e3   : > { %v1493_v63 = vmul.f32 %v1975_v33, %v1280_v32  ;;  %v1494_v2 = vmul.f32 %v1976_v10, %v1280_v32  ;;  %v1491_v24 = vmul.f32 %v1977_v12, %v1273_v50  ;;  %v1492_v62 = vmul.f32 %v1978_v27, %v1273_v50  ;;  %v2000_v32 = vld [vmem:[%s2372_s0 + $0xe8] sm:$0xff]  ;;  %v2001_v33 = vld [vmem:[%s2372_s0 + $0xb0] sm:$0xff]  ;;  %v2002_v10 = vld [vmem:[%s2372_s0 + $0xb8] sm:$0xff] }
 0x5e4   : > { %v2003_v27 = vld [vmem:[%s2372_s0 + $0x100] sm:$0xff] }
 0x5e5   : > { %1557 = vst [vmem:[%s2962_s30 + $0x10] sm:$0xff] %v1493_v63  ;;  %1558 = vst [vmem:[%s2962_s30 + $0x18] sm:$0xff] %v1494_v2 }
 0x5e6   : > { %1555 = vst [vmem:[%s2962_s30] sm:$0xff] %v1491_v24  ;;  %1556 = vst [vmem:[%s2962_s30 + $0x8] sm:$0xff] %v1492_v62  ;;  %v1301_v16 = vpop.permute.xlu0 %1300  ;;  %v1287_v13 = vpop.permute.xlu1 %1286 }
 0x5e7   : > { %v1499_v42 = vmul.f32 %v1979_v14, %v1301_v16  ;;  %v1500_v52 = vmul.f32 %v1980_v29, %v1301_v16  ;;  %v1495_v30 = vmul.f32 %v1981_v48, %v1287_v13  ;;  %v1496_v21 = vmul.f32 %v1982_v18, %v1287_v13  ;;  %v2004_v16 = vld [vmem:[%s2372_s0 + $0x108] sm:$0xff]  ;;  %v2005_v14 = vld [vmem:[%s2372_s0 + $0xd0] sm:$0xff]  ;;  %v2006_v29 = vld [vmem:[%s2372_s0 + $0xd8] sm:$0xff] }
 0x5e8   : > { %v2007_v18 = vld [vmem:[%s2372_s0 + $0x120] sm:$0xff] }
 0x5e9   : > { %1563 = vst [vmem:[%s2962_s30 + $0x40] sm:$0xff] %v1499_v42  ;;  %1564 = vst [vmem:[%s2962_s30 + $0x48] sm:$0xff] %v1500_v52 }
 0x5ea   : > { %1559 = vst [vmem:[%s2962_s30 + $0x20] sm:$0xff] %v1495_v30  ;;  %1560 = vst [vmem:[%s2962_s30 + $0x28] sm:$0xff] %v1496_v21  ;;  %v1315_v41 = vpop.permute.xlu0 %1314  ;;  %v1294_v37 = vpop.permute.xlu1 %1293 }
 0x5eb   : > { %v1503_v4 = vmul.f32 %v1983_v45, %v1315_v41  ;;  %v1504_v43 = vmul.f32 %v1984_v55, %v1315_v41  ;;  %v1497_v15 = vmul.f32 %v1985_v22, %v1294_v37  ;;  %v1498_v9 = vmul.f32 %v1986_v31, %v1294_v37  ;;  %v2008_v41 = vld [vmem:[%s2372_s0 + $0x128] sm:$0xff]  ;;  %v2009_v45 = vld [vmem:[%s2372_s0 + $0xf0] sm:$0xff]  ;;  %v2010_v55 = vld [vmem:[%s2372_s0 + $0xf8] sm:$0xff] }
 0x5ec   : > { %v2011_v31 = vld [vmem:[%s2372_s0 + $0x140] sm:$0xff] }
 0x5ed   : > { %1567 = vst [vmem:[%s2962_s30 + $0x60] sm:$0xff] %v1503_v4  ;;  %1568 = vst [vmem:[%s2962_s30 + $0x68] sm:$0xff] %v1504_v43 }
 0x5ee   : > { %1561 = vst [vmem:[%s2962_s30 + $0x30] sm:$0xff] %v1497_v15  ;;  %1562 = vst [vmem:[%s2962_s30 + $0x38] sm:$0xff] %v1498_v9  ;;  %v1329_v44 = vpop.permute.xlu0 %1328  ;;  %v1308_v49 = vpop.permute.xlu1 %1307 }
 0x5ef   : > { %v1507_v39 = vmul.f32 %v1987_v35, %v1329_v44  ;;  %v1508_v36 = vmul.f32 %v1988_v40, %v1329_v44  ;;  %v1501_v6 = vmul.f32 %v1989_v5, %v1308_v49  ;;  %v1502_v0 = vmul.f32 %v1990_v38, %v1308_v49  ;;  %v2012_v44 = vld [vmem:[%s2372_s0 + $0x148] sm:$0xff]  ;;  %v2013_v35 = vld [vmem:[%s2372_s0 + $0x110] sm:$0xff]  ;;  %v2014_v40 = vld [vmem:[%s2372_s0 + $0x118] sm:$0xff] }
 0x5f0   : > { %v2015_v38 = vld [vmem:[%s2372_s0 + $0x160] sm:$0xff] }
 0x5f1   : > { %1571 = vst [vmem:[%s2962_s30 + $0x80] sm:$0xff] %v1507_v39  ;;  %1572 = vst [vmem:[%s2962_s30 + $0x88] sm:$0xff] %v1508_v36 }
 0x5f2   : > { %1565 = vst [vmem:[%s2962_s30 + $0x50] sm:$0xff] %v1501_v6  ;;  %1566 = vst [vmem:[%s2962_s30 + $0x58] sm:$0xff] %v1502_v0  ;;  %v1343_v1 = vpop.permute.xlu0 %1342  ;;  %v1322_v46 = vpop.permute.xlu1 %1321 }
 0x5f3   : > { %v1511_v34 = vmul.f32 %v1991_v47, %v1343_v1  ;;  %v1512_v19 = vmul.f32 %v1992_v3, %v1343_v1  ;;  %v1505_v8 = vmul.f32 %v1993_v28, %v1322_v46  ;;  %v1506_v57 = vmul.f32 %v1994_v20, %v1322_v46  ;;  %v2016_v1 = vld [vmem:[%s2372_s0 + $0x168] sm:$0xff]  ;;  %v2017_v47 = vld [vmem:[%s2372_s0 + $0x130] sm:$0xff]  ;;  %v2018_v3 = vld [vmem:[%s2372_s0 + $0x138] sm:$0xff] }
 0x5f4   : > { %v2019_v20 = vld [vmem:[%s2372_s0 + $0x180] sm:$0xff] }
 0x5f5   : > { %1575 = vst [vmem:[%s2962_s30 + $0xa0] sm:$0xff] %v1511_v34  ;;  %1576 = vst [vmem:[%s2962_s30 + $0xa8] sm:$0xff] %v1512_v19 }
 0x5f6   : > { %1569 = vst [vmem:[%s2962_s30 + $0x70] sm:$0xff] %v1505_v8  ;;  %1570 = vst [vmem:[%s2962_s30 + $0x78] sm:$0xff] %v1506_v57  ;;  %v1357_v7 = vpop.permute.xlu0 %1356  ;;  %v1336_v11 = vpop.permute.xlu1 %1335 }
 0x5f7   : > { %v1515_v25 = vmul.f32 %v1995_v56, %v1357_v7  ;;  %v1516_v23 = vmul.f32 %v1996_v26, %v1357_v7  ;;  %v1509_v54 = vmul.f32 %v1997_v53, %v1336_v11  ;;  %v1510_v58 = vmul.f32 %v1998_v51, %v1336_v11  ;;  %v2020_v7 = vld [vmem:[%s2372_s0 + $0x188] sm:$0xff]  ;;  %v2021_v56 = vld [vmem:[%s2372_s0 + $0x150] sm:$0xff]  ;;  %v2022_v26 = vld [vmem:[%s2372_s0 + $0x158] sm:$0xff] }
 0x5f8   : > { %v2023_v51 = vld [vmem:[%s2372_s0 + $0x1a0] sm:$0xff] }
 0x5f9   : > { %1579 = vst [vmem:[%s2962_s30 + $0xc0] sm:$0xff] %v1515_v25  ;;  %1580 = vst [vmem:[%s2962_s30 + $0xc8] sm:$0xff] %v1516_v23 }
 0x5fa   : > { %1573 = vst [vmem:[%s2962_s30 + $0x90] sm:$0xff] %v1509_v54  ;;  %1574 = vst [vmem:[%s2962_s30 + $0x98] sm:$0xff] %v1510_v58  ;;  %v1371_v17 = vpop.permute.xlu0 %1370  ;;  %v1350_v59 = vpop.permute.xlu1 %1349 }
 0x5fb   : > { %v1519_v61 = vmul.f32 %v1999_v60, %v1371_v17  ;;  %v1520_v50 = vmul.f32 %v2000_v32, %v1371_v17  ;;  %v1513_v63 = vmul.f32 %v2001_v33, %v1350_v59  ;;  %v1514_v2 = vmul.f32 %v2002_v10, %v1350_v59  ;;  %v2024_v17 = vld [vmem:[%s2372_s0 + $0x1a8] sm:$0xff]  ;;  %v2025_v60 = vld [vmem:[%s2372_s0 + $0x170] sm:$0xff]  ;;  %v2026_v32 = vld [vmem:[%s2372_s0 + $0x178] sm:$0xff] }
 0x5fc   : > { %v2027_v10 = vld [vmem:[%s2372_s0 + $0x1c0] sm:$0xff] }
 0x5fd   : > { %1583 = vst [vmem:[%s2962_s30 + $0xe0] sm:$0xff] %v1519_v61  ;;  %1584 = vst [vmem:[%s2962_s30 + $0xe8] sm:$0xff] %v1520_v50 }
 0x5fe   : > { %1577 = vst [vmem:[%s2962_s30 + $0xb0] sm:$0xff] %v1513_v63  ;;  %1578 = vst [vmem:[%s2962_s30 + $0xb8] sm:$0xff] %v1514_v2  ;;  %v1385_v12 = vpop.permute.xlu0 %1384  ;;  %v1364_v24 = vpop.permute.xlu1 %1363 }
 0x5ff   : > { %v1523_v62 = vmul.f32 %v2003_v27, %v1385_v12  ;;  %v1524_v13 = vmul.f32 %v2004_v16, %v1385_v12  ;;  %v1517_v42 = vmul.f32 %v2005_v14, %v1364_v24  ;;  %v1518_v52 = vmul.f32 %v2006_v29, %v1364_v24  ;;  %v2028_v12 = vld [vmem:[%s2372_s0 + $0x1c8] sm:$0xff]  ;;  %v2029_v27 = vld [vmem:[%s2372_s0 + $0x190] sm:$0xff]  ;;  %v2030_v16 = vld [vmem:[%s2372_s0 + $0x198] sm:$0xff] }
 0x600   : > { %v2031_v29 = vld [vmem:[%s2372_s0 + $0x1e0] sm:$0xff] }
 0x601   : > { %1587 = vst [vmem:[%s2962_s30 + $0x100] sm:$0xff] %v1523_v62  ;;  %1588 = vst [vmem:[%s2962_s30 + $0x108] sm:$0xff] %v1524_v13 }
 0x602   : > { %1581 = vst [vmem:[%s2962_s30 + $0xd0] sm:$0xff] %v1517_v42  ;;  %1582 = vst [vmem:[%s2962_s30 + $0xd8] sm:$0xff] %v1518_v52  ;;  %v1399_v48 = vpop.permute.xlu0 %1398  ;;  %v1378_v30 = vpop.permute.xlu1 %1377 }
 0x603   : > { %v1527_v21 = vmul.f32 %v2007_v18, %v1399_v48  ;;  %v1528_v37 = vmul.f32 %v2008_v41, %v1399_v48  ;;  %v1521_v4 = vmul.f32 %v2009_v45, %v1378_v30  ;;  %v1522_v43 = vmul.f32 %v2010_v55, %v1378_v30  ;;  %v2032_v48 = vld [vmem:[%s2372_s0 + $0x1e8] sm:$0xff]  ;;  %v2033_v18 = vld [vmem:[%s2372_s0 + $0x1b0] sm:$0xff]  ;;  %v2034_v41 = vld [vmem:[%s2372_s0 + $0x1b8] sm:$0xff] }
 0x605   : > { %1591 = vst [vmem:[%s2962_s30 + $0x120] sm:$0xff] %v1527_v21  ;;  %1592 = vst [vmem:[%s2962_s30 + $0x128] sm:$0xff] %v1528_v37 }
 0x606   : > { %1585 = vst [vmem:[%s2962_s30 + $0xf0] sm:$0xff] %v1521_v4  ;;  %1586 = vst [vmem:[%s2962_s30 + $0xf8] sm:$0xff] %v1522_v43  ;;  %v1413_v22 = vpop.permute.xlu0 %1412  ;;  %v1392_v15 = vpop.permute.xlu1 %1391  ;;  %v2035_v4 = vld [vmem:[%s2372_s0 + $0x1d0] sm:$0xff]  ;;  %v2036_v43 = vld [vmem:[%s2372_s0 + $0x1d8] sm:$0xff] }
 0x607   : > { %v1531_v9 = vmul.f32 %v2011_v31, %v1413_v22  ;;  %v1532_v49 = vmul.f32 %v2012_v44, %v1413_v22  ;;  %v1525_v39 = vmul.f32 %v2013_v35, %v1392_v15  ;;  %v1526_v36 = vmul.f32 %v2014_v40, %v1392_v15  ;;  %v2037_v31 = vld [vmem:[%s2372_s0 + $0x1f0] sm:$0xff]  ;;  %v2038_v44 = vld [vmem:[%s2372_s0 + $0x1f8] sm:$0xff] }
 0x609   : > { %1595 = vst [vmem:[%s2962_s30 + $0x140] sm:$0xff] %v1531_v9  ;;  %1596 = vst [vmem:[%s2962_s30 + $0x148] sm:$0xff] %v1532_v49 }
 0x60a   : > { %1589 = vst [vmem:[%s2962_s30 + $0x110] sm:$0xff] %v1525_v39  ;;  %1590 = vst [vmem:[%s2962_s30 + $0x118] sm:$0xff] %v1526_v36  ;;  %v1427_v5 = vpop.permute.xlu0 %1426  ;;  %v1406_v6 = vpop.permute.xlu1 %1405 }
 0x60b   : > { %v1535_v0 = vmul.f32 %v2015_v38, %v1427_v5  ;;  %v1536_v46 = vmul.f32 %v2016_v1, %v1427_v5  ;;  %v1529_v34 = vmul.f32 %v2017_v47, %v1406_v6  ;;  %v1530_v19 = vmul.f32 %v2018_v3, %v1406_v6 }
 0x60d   : > { %1599 = vst [vmem:[%s2962_s30 + $0x160] sm:$0xff] %v1535_v0  ;;  %1600 = vst [vmem:[%s2962_s30 + $0x168] sm:$0xff] %v1536_v46 }
 0x60e   : > { %1593 = vst [vmem:[%s2962_s30 + $0x130] sm:$0xff] %v1529_v34  ;;  %1594 = vst [vmem:[%s2962_s30 + $0x138] sm:$0xff] %v1530_v19  ;;  %v1441_v28 = vpop.permute.xlu0 %1440  ;;  %v1420_v8 = vpop.permute.xlu1 %1419 }
 0x60f   : > { %v1539_v57 = vmul.f32 %v2019_v20, %v1441_v28  ;;  %v1540_v11 = vmul.f32 %v2020_v7, %v1441_v28  ;;  %v1533_v25 = vmul.f32 %v2021_v56, %v1420_v8  ;;  %v1534_v23 = vmul.f32 %v2022_v26, %v1420_v8 }
 0x611   : > { %1603 = vst [vmem:[%s2962_s30 + $0x180] sm:$0xff] %v1539_v57  ;;  %1604 = vst [vmem:[%s2962_s30 + $0x188] sm:$0xff] %v1540_v11 }
 0x612   : > { %1597 = vst [vmem:[%s2962_s30 + $0x150] sm:$0xff] %v1533_v25  ;;  %1598 = vst [vmem:[%s2962_s30 + $0x158] sm:$0xff] %v1534_v23  ;;  %v1455_v53 = vpop.permute.xlu0 %1454  ;;  %v1434_v54 = vpop.permute.xlu1 %1433 }
 0x613   : > { %v1543_v58 = vmul.f32 %v2023_v51, %v1455_v53  ;;  %v1544_v59 = vmul.f32 %v2024_v17, %v1455_v53  ;;  %v1537_v61 = vmul.f32 %v2025_v60, %v1434_v54  ;;  %v1538_v50 = vmul.f32 %v2026_v32, %v1434_v54 }
 0x615   : > { %1607 = vst [vmem:[%s2962_s30 + $0x1a0] sm:$0xff] %v1543_v58  ;;  %1608 = vst [vmem:[%s2962_s30 + $0x1a8] sm:$0xff] %v1544_v59 }
 0x616   : > { %1601 = vst [vmem:[%s2962_s30 + $0x170] sm:$0xff] %v1537_v61  ;;  %1602 = vst [vmem:[%s2962_s30 + $0x178] sm:$0xff] %v1538_v50  ;;  %v1469_v33 = vpop.permute.xlu0 %1468  ;;  %v1448_v63 = vpop.permute.xlu1 %1447 }
 0x617   : > { %v1547_v2 = vmul.f32 %v2027_v10, %v1469_v33  ;;  %v1548_v24 = vmul.f32 %v2028_v12, %v1469_v33  ;;  %v1541_v62 = vmul.f32 %v2029_v27, %v1448_v63  ;;  %v1542_v13 = vmul.f32 %v2030_v16, %v1448_v63 }
 0x619   : > { %1611 = vst [vmem:[%s2962_s30 + $0x1c0] sm:$0xff] %v1547_v2  ;;  %1612 = vst [vmem:[%s2962_s30 + $0x1c8] sm:$0xff] %v1548_v24 }
 0x61a   : > { %1605 = vst [vmem:[%s2962_s30 + $0x190] sm:$0xff] %v1541_v62  ;;  %1606 = vst [vmem:[%s2962_s30 + $0x198] sm:$0xff] %v1542_v13  ;;  %v1483_v14 = vpop.permute.xlu0 %1482  ;;  %v1462_v42 = vpop.permute.xlu1 %1461 }
 0x61b   : > { %v1551_v52 = vmul.f32 %v2031_v29, %v1483_v14  ;;  %v1552_v30 = vmul.f32 %v2032_v48, %v1483_v14  ;;  %v1545_v21 = vmul.f32 %v2033_v18, %v1462_v42  ;;  %v1546_v37 = vmul.f32 %v2034_v41, %v1462_v42 }
 0x61d   : > { %1615 = vst [vmem:[%s2962_s30 + $0x1e0] sm:$0xff] %v1551_v52  ;;  %1616 = vst [vmem:[%s2962_s30 + $0x1e8] sm:$0xff] %v1552_v30 }
 0x61e   : > { %1609 = vst [vmem:[%s2962_s30 + $0x1b0] sm:$0xff] %v1545_v21  ;;  %1610 = vst [vmem:[%s2962_s30 + $0x1b8] sm:$0xff] %v1546_v37  ;;  %v1476_v45 = vpop.permute.xlu1 %1475 }
 0x61f   : > { %v1549_v55 = vmul.f32 %v2035_v4, %v1476_v45  ;;  %v1550_v22 = vmul.f32 %v2036_v43, %v1476_v45 }
 0x621   : > { %1613 = vst [vmem:[%s2962_s30 + $0x1d0] sm:$0xff] %v1549_v55  ;;  %1614 = vst [vmem:[%s2962_s30 + $0x1d8] sm:$0xff] %v1550_v22 }
 0x622   : > { %v1490_v15 = vpop.permute.xlu1 %1489 }
 0x623   : > { %v1553_v9 = vmul.f32 %v2037_v31, %v1490_v15  ;;  %v1554_v49 = vmul.f32 %v2038_v44, %v1490_v15 }
 0x625   : > { %1617 = vst [vmem:[%s2962_s30 + $0x1f0] sm:$0xff] %v1553_v9  ;;  %1618 = vst [vmem:[%s2962_s30 + $0x1f8] sm:$0xff] %v1554_v49 }
 0x626   : > { %2097 = shalt.err (!%p2094_p8)
}
 0x627   : > { %s2098_s0 = scalar_lea.hbm %s3089_s27, 8192  ;;  %s2102_s19 = scalar_lea.hbm %s3150_s6, 16384 }
 0x628   : > { %p2099_p4 = scmp.ne.s32.totalorder %s3089_s27, %s2098_s0  ;;  %p2103_p5 = scmp.lt.u32.totalorder %s3089_s27, %s3150_s6 }
 0x629   : > { %p2104_p13 = scmp.lt.u32.totalorder %s2102_s19, %s2098_s0  ;;  %p2106_p7 = scmp.lt.u32.totalorder %s2098_s0, %s3089_s27 }
 0x62a   : > { %p2100_p10 = pnand %p2099_p4, %p3238_p12 }
 0x62b   : > { %p2105_p3 = por %p2104_p13, %p2103_p5 }
 0x62c   : > { %p2101_p11 = pneg %p2100_p10 }
 0x62d   : > { %p2107_p2 = por %p2106_p7, %p2105_p3 }
 0x62f   : > { %p2108_p6 = pnand %p2107_p2, %p2101_p11 }
 0x631   : > { %2111 = shalt.err (!%p2108_p6)
}
 0x632   : > { %s2180_s15 = smov 256   ;;  %s2181_s16 = smov 16  }
 0x633   : > { %1891 = dma.vmem_to_hbm [thread:$0]  (%p3238_p12), %s3091_s14, 8192, %s3089_s27, %s1620_s24, %s2180_s15, %s2180_s15, %s2181_s16  }
 0x634 PF: > { %s1650_s8 = sand.u32 1, %s2150_s21   ;;  %p3239_p0 = scmp.ne.s32.totalorder %s3183_s10, 0 }
 0x635   : > { %p3240_p1 = scmp.ge.s32.totalorder %s2170_s26, 2  ;;  %s1651_s13 = scalar_lea.sflag [#allocation4], %s1650_s8 }
 0x637   : > { %p1902_p9 = pnand %p3240_p1, %p3239_p0 }
 0x639   : > { %2145 = dma.done.wait (!%p1902_p9), %s1651_s13, 8192  }
 0x63a   : > { %2147 = vsyncadd (!%p1902_p9), %s1651_s13, 4294959104  ;;  %s23_s26 = sadd.s32 1, %s2170_s26   ;;  %s3241_s21 = smov %s2154_s22 }
 0x63b   : > { %p20_p8 = scmp.ge.s32.totalorder %s23_s26, 4   ;;  %s3242_s22 = smov %s2158_s23 }
 0x63c   : > { %s3243_s23 = smov %s2327_s18  ;;  %s3244_s24 = smov %s2166_s25 }
 0x63d   : > { %s3245_s25 = smov %s3247_s17  ;;  %22 = sbr.rel (!%p20_p8) target bundleno = 9 (0x9), region = 125 }
 0x644   :  { %1656 = vsyncpa [#allocation3], 1 }
 0x645   :  { %1658 = vsyncpa [#allocation3 + $0x1], 1 }
 0x646   :  { %1659 = vsyncpa [#allocation4], 1 }
 0x647   :  { %1661 = vsyncpa [#allocation4 + $0x1], 1 }
 0x648   :  { %1662 = vsyncpa [#allocation5], 1 }
 0x649   :  { %1664 = vsyncpa [#allocation5 + $0x1], 1 }

</bundles_post_ra>
